<compile_context>
chip_gen: v5e
topology: v5e:2x2
jax: 0.10.0
libtpu: 0.0.40
codegen_flags: <defaults>
</compile_context>

<pallas_src>
import functools

import jax
import jax.numpy as jnp
from jax import lax
from jax.experimental import pallas as pl
from jax.experimental.pallas import tpu as pltpu


def _attention_kernel(x_ref, w_ref, b_ref, gamma_ref, o_ref,
                      k_scr, q_scr, v_scr, *, tq, cq, mxu_dtype):
    """One (batch, query-tile) grid step.

    x_ref    : (1, C, HW)     channel-major input, resident for all query tiles of b
    w_ref    : (2*Cq+C, C)    stacked [Wk; Wq; Wv], already in mxu_dtype
    b_ref    : (2*Cq+C, 1)    stacked [bk; bq; bv], f32
    gamma_ref: (1,) f32       scalar in SMEM
    o_ref    : (1, C, TQ)     lane-dense output tile
    k_scr    : (HW, Cq)       keys, pre-transposed, persists across query tiles
    q_scr    : (Cq, HW)       queries for all positions
    v_scr    : (C, HW)        values
    """
    qi = pl.program_id(1)

    # ---- fused K/Q/V projection: ONE MXU matmul per batch element --------------
    @pl.when(qi == 0)
    def _():
        xm = x_ref[0].astype(mxu_dtype)                                   # (C, HW)
        kqv = lax.dot_general(w_ref[...], xm, (((1,), (0,)), ((), ())),
                              preferred_element_type=jnp.float32)         # (2Cq+C, HW)
        kqv = kqv + b_ref[...]                                            # bias in f32
        # K is transposed once per batch so every per-tile scores matmul is a
        # natural (M,K)@(K,N) contraction (no per-tile relayout of K).
        k_scr[...] = jnp.transpose(kqv[0:cq, :]).astype(k_scr.dtype)      # (HW, Cq)
        q_scr[...] = kqv[cq:2 * cq, :].astype(q_scr.dtype)                # (Cq, HW)
        v_scr[...] = kqv[2 * cq:, :].astype(v_scr.dtype)                  # (C,  HW)

    # ---- per-query-tile attention ----------------------------------------------
    start = pl.multiple_of(qi * tq, tq)
    q_tile = q_scr[:, pl.ds(start, tq)]                                   # (Cq, TQ)

    # scores[j, i] = k_j . q_i  (keys in sublanes, queries in lanes)
    scores = lax.dot_general(k_scr[...], q_tile, (((1,), (0,)), ((), ())),
                             preferred_element_type=jnp.float32)          # (HW, TQ)

    # softmax over keys (axis 0); all stats in f32; normalization deferred.
    m = jnp.max(scores, axis=0, keepdims=True)                            # (1, TQ)
    p = jnp.exp(scores - m)                                               # (HW, TQ)
    s = jnp.sum(p, axis=0, keepdims=True)                                 # (1, TQ)

    # out[c, i] = sum_j v[c, j] * p[j, i]   (natural MXU orientation, no attn^T)
    out = lax.dot_general(v_scr[...], p.astype(mxu_dtype),
                          (((1,), (0,)), ((), ())),
                          preferred_element_type=jnp.float32)             # (C, TQ)
    out = out * pl.reciprocal(s, approx=True)     # EUP; divide shrunk to C*TQ

    x_q = x_ref[0, :, pl.ds(start, tq)]                                   # (C, TQ)
    o_ref[0] = (gamma_ref[0] * out + x_q.astype(jnp.float32)).astype(o_ref.dtype)


def attention_block(x_nchw, wq, bq, wk, bk, wv, bv, gamma, *,
                    tq=None, mxu_dtype=jnp.bfloat16):
    """Pallas forward of the PyTorch AttentionBlock (NCHW in, NCHW out)."""
    B, C, H, W = x_nchw.shape
    HW = H * W
    Cq = wq.shape[0]

    # Channel-major (B, C, HW) is a pure reshape of NCHW -> no HBM transpose.
    # (x is kept in its input dtype so the residual add stays full precision;
    #  pre-casting x to bf16 in the wrapper would halve its DMA/VMEM if the
    #  caller accepts bf16 activations.)
    x_chw = x_nchw.reshape(B, C, HW)

    # Stacked projection weights / biases -> single fused in-kernel matmul.
    w_all = jnp.concatenate([wk, wq, wv], axis=0).astype(mxu_dtype)       # (2Cq+C, C)
    b_all = jnp.concatenate([bk, bq, bv], axis=0).astype(jnp.float32).reshape(-1, 1)

    # Query-tile size: fill the MXU N dim (256 on v6e/v7x, 128 on v5e); must be a
    # multiple of 128 (lane-dense stores) or the full HW.
    if tq is None:
        try:
            kind = jax.devices()[0].device_kind.lower()
        except Exception:
            kind = ""
        tq = 128 if "v5" in kind else 256
    tq = min(tq, HW)
    if HW % tq != 0 or (tq % 128 != 0 and tq != HW):
        tq = HW
    nq = HW // tq

    # VMEM budget: 3/4 of physical capacity (96 MiB v5e/v6e, 48 MiB v7x).
    try:
        vmem_cap = pltpu.get_tpu_info().vmem_capacity_bytes
    except Exception:
        vmem_cap = 128 * 1024 * 1024
    vmem_limit = int((vmem_cap * 3) // 4)

    itemsize = jnp.dtype(x_nchw.dtype).itemsize
    w_bytes = w_all.size * jnp.dtype(mxu_dtype).itemsize + b_all.size * 4 + 4
    cost = pl.CostEstimate(
        flops=2 * B * HW * ((2 * Cq + C) * C + (Cq + C) * HW),
        transcendentals=B * HW * HW,
        bytes_accessed=2 * B * C * HW * itemsize + w_bytes,
    )

    kernel = functools.partial(_attention_kernel, tq=tq, cq=Cq, mxu_dtype=mxu_dtype)

    out_chw = pl.pallas_call(
        kernel,
        out_shape=jax.ShapeDtypeStruct((B, C, HW), x_nchw.dtype),
        grid_spec=pltpu.PrefetchScalarGridSpec(
            num_scalar_prefetch=0,
            grid=(B, nq),
            in_specs=[
                pl.BlockSpec((1, C, HW), lambda b, qi: (b, 0, 0)),        # x (channel-major)
                # Constant-index weight/bias blocks (could be single-buffered
                # via pipeline_mode once Buffered(1) is relied upon).
                pl.BlockSpec((2 * Cq + C, C), lambda b, qi: (0, 0)),      # [Wk;Wq;Wv]
                pl.BlockSpec((2 * Cq + C, 1), lambda b, qi: (0, 0)),      # [bk;bq;bv]
                pl.BlockSpec(memory_space=pltpu.MemorySpace.SMEM),        # gamma scalar
            ],
            out_specs=pl.BlockSpec((1, C, tq), lambda b, qi: (b, 0, qi)),
            scratch_shapes=[
                pltpu.VMEM((HW, Cq), mxu_dtype),   # K^T, persists across query tiles
                pltpu.VMEM((Cq, HW), mxu_dtype),   # Q for all positions
                pltpu.VMEM((C, HW), mxu_dtype),    # V
            ],
        ),
        compiler_params=pltpu.CompilerParams(
            # Batch axis shards across TensorCores (v7x); query-tile axis is
            # "arbitrary" because K/Q/V scratch is filled at qi == 0 and reused.
            dimension_semantics=("parallel", "arbitrary"),
            vmem_limit_bytes=vmem_limit,
        ),
        cost_estimate=cost,
    )(x_chw, w_all, b_all, gamma.reshape(1).astype(jnp.float32))

    return out_chw.reshape(B, C, H, W)


def reference_attention_block(x, wq, bq, wk, bk, wv, bv, gamma):
    """Pure-JAX port of the PyTorch forward, for correctness checking."""
    B, C, H, W = x.shape
    HW = H * W

    def conv1x1(x, w, b):
        return jnp.einsum('bchw,oc->bohw', x, w) + b[None, :, None, None]

    query = conv1x1(x, wq, bq).reshape(B, -1, HW).transpose(0, 2, 1)      # (B, HW, Cq)
    key = conv1x1(x, wk, bk).reshape(B, -1, HW)                           # (B, Cq, HW)
    attention = jax.nn.softmax(jnp.einsum('bic,bcj->bij', query, key), axis=-1)
    value = conv1x1(x, wv, bv).reshape(B, -1, HW)                         # (B, C, HW)
    out = jnp.einsum('bcj,bij->bci', value, attention).reshape(B, C, H, W)
    return gamma[0] * out + x


if __name__ == "__main__":
    B, C, H, W = 2, 16, 16, 16       # in_channels=16 -> query/key channels = 16 // 8 = 2
    Cq = C // 8

    key = jax.random.PRNGKey(0)
    kx, kq, kbq, kk, kbk, kv, kbv = jax.random.split(key, 7)

    x = jax.random.normal(kx, (B, C, H, W), dtype=jnp.float32)
    wq = 0.1 * jax.random.normal(kq, (Cq, C), dtype=jnp.float32)
    bq = 0.1 * jax.random.normal(kbq, (Cq,), dtype=jnp.float32)
    wk = 0.1 * jax.random.normal(kk, (Cq, C), dtype=jnp.float32)
    bk = 0.1 * jax.random.normal(kbk, (Cq,), dtype=jnp.float32)
    wv = 0.1 * jax.random.normal(kv, (C, C), dtype=jnp.float32)
    bv = 0.1 * jax.random.normal(kbv, (C,), dtype=jnp.float32)
    # PyTorch init is gamma = 0 (out == x exactly); use a nonzero gamma so the
    # attention path is actually exercised by the check.
    gamma = jnp.array([0.5], dtype=jnp.float32)

    ref = reference_attention_block(x, wq, bq, wk, bk, wv, bv, gamma)

    # Default path: bf16 MXU operands, f32 accumulation / softmax stats / residual.
    out = attention_block(x, wq, bq, wk, bk, wv, bv, gamma)
    out = jax.block_until_ready(out)
    assert out.shape == (B, C, H, W)
    err = float(jnp.max(jnp.abs(out - ref)))
    assert err < 2e-2, f"bf16 MXU path max abs err = {err}"

    # f32-fed MXU path (tighter check; approx reciprocal is the only extra error).
    out_f32 = attention_block(x, wq, bq, wk, bk, wv, bv, gamma,
                              mxu_dtype=jnp.float32)
    out_f32 = jax.block_until_ready(out_f32)
    err_f32 = float(jnp.max(jnp.abs(out_f32 - ref)))
    assert err_f32 < 5e-3, f"f32 MXU path max abs err = {err_f32}"

    print("KERNEL_OK")
</pallas_src>

<mosaic_0001>
module attributes {stable_mosaic.version = 11 : i64} {
  func.func @_attention_kernel(%arg0: i32, %arg1: i32, %arg2: memref<1x16x256xf32, #tpu.memory_space<vmem>>, %arg3: memref<20x16xbf16, #tpu.memory_space<vmem>>, %arg4: memref<20x1xf32, #tpu.memory_space<vmem>>, %arg5: memref<1xf32, #tpu.memory_space<smem>>, %arg6: memref<1x16x256xf32, #tpu.memory_space<vmem>>, %arg7: memref<256x2xbf16, #tpu.memory_space<vmem>>, %arg8: memref<2x256xbf16, #tpu.memory_space<vmem>>, %arg9: memref<16x256xbf16, #tpu.memory_space<vmem>>) attributes {dimension_semantics = [#tpu.dimension_semantics<parallel>, #tpu.dimension_semantics<arbitrary>], iteration_bounds = array<i64: 2, 1>, scalar_prefetch = 0 : i64, scratch_operands = 3 : i64, tpu.core_type = #tpu.core_type<tc>, window_params = [{transform_indices = @transform_0, window_bounds = array<i64: 1, 16, 256>}, {pipeline_mode = #tpu.pipeline_mode<synchronous>, transform_indices = @transform_1, window_bounds = array<i64: 20, 16>}, {pipeline_mode = #tpu.pipeline_mode<synchronous>, transform_indices = @transform_2, window_bounds = array<i64: 20, 1>}, {transform_indices = @transform_3, window_bounds = array<i64: 1>}, {transform_indices = @transform_4, window_bounds = array<i64: 1, 16, 256>}]} {
    %c0_i32 = arith.constant 0 : i32
    %0 = arith.cmpi eq, %arg1, %c0_i32 : i32
    %1 = arith.extui %0 : i1 to i32
    %c0_i32_0 = arith.constant 0 : i32
    %2 = arith.cmpi ne, %1, %c0_i32_0 : i32
    scf.if %2 {
      %c0_14 = arith.constant 0 : index
      %c0_15 = arith.constant 0 : index
      %c0_16 = arith.constant 0 : index
      %32 = vector.load %arg2[%c0_14, %c0_15, %c0_16] : memref<1x16x256xf32, #tpu.memory_space<vmem>>, vector<1x16x256xf32>
      %33 = vector.shape_cast %32 : vector<1x16x256xf32> to vector<16x256xf32>
      %34 = arith.truncf %33 : vector<16x256xf32> to vector<16x256xbf16>
      %c0_17 = arith.constant 0 : index
      %c0_18 = arith.constant 0 : index
      %35 = vector.load %arg3[%c0_17, %c0_18] : memref<20x16xbf16, #tpu.memory_space<vmem>>, vector<20x16xbf16>
      %cst_19 = arith.constant dense<0.000000e+00> : vector<20x256xf32>
      %36 = tpu.matmul %35, %34, %cst_19 {dimension_numbers = #tpu.dot_dimension_numbers<[1], [0], [0], [1], [0, 0, 1, 1], [], []>} : vector<20x16xbf16>, vector<16x256xbf16>, vector<20x256xf32> -> vector<20x256xf32>
      %c0_20 = arith.constant 0 : index
      %c0_21 = arith.constant 0 : index
      %37 = vector.load %arg4[%c0_20, %c0_21] : memref<20x1xf32, #tpu.memory_space<vmem>>, vector<20x1xf32>
      %38 = vector.broadcast %37 : vector<20x1xf32> to vector<20x256xf32>
      %39 = arith.addf %36, %38 : vector<20x256xf32>
      %40 = vector.extract_strided_slice %39 {offsets = [0, 0], sizes = [2, 256], strides = [1, 1]} : vector<20x256xf32> to vector<2x256xf32>
      %41 = tpu.transpose %40, [1, 0] : vector<2x256xf32> -> vector<256x2xf32>
      %42 = arith.truncf %41 : vector<256x2xf32> to vector<256x2xbf16>
      %c0_22 = arith.constant 0 : index
      %c0_23 = arith.constant 0 : index
      %43 = vector.load %arg7[%c0_22, %c0_23] : memref<256x2xbf16, #tpu.memory_space<vmem>>, vector<256x2xbf16>
      tpu.vector_store %arg7[%c0_22, %c0_23], %42 {strides = array<i32>} : memref<256x2xbf16, #tpu.memory_space<vmem>>, vector<256x2xbf16>,
      %44 = vector.extract_strided_slice %39 {offsets = [2, 0], sizes = [2, 256], strides = [1, 1]} : vector<20x256xf32> to vector<2x256xf32>
      %45 = arith.truncf %44 : vector<2x256xf32> to vector<2x256xbf16>
      %c0_24 = arith.constant 0 : index
      %c0_25 = arith.constant 0 : index
      %46 = vector.load %arg8[%c0_24, %c0_25] : memref<2x256xbf16, #tpu.memory_space<vmem>>, vector<2x256xbf16>
      tpu.vector_store %arg8[%c0_24, %c0_25], %45 {strides = array<i32>} : memref<2x256xbf16, #tpu.memory_space<vmem>>, vector<2x256xbf16>,
      %47 = vector.extract_strided_slice %39 {offsets = [4, 0], sizes = [16, 256], strides = [1, 1]} : vector<20x256xf32> to vector<16x256xf32>
      %48 = arith.truncf %47 : vector<16x256xf32> to vector<16x256xbf16>
      %c0_26 = arith.constant 0 : index
      %c0_27 = arith.constant 0 : index
      %49 = vector.load %arg9[%c0_26, %c0_27] : memref<16x256xbf16, #tpu.memory_space<vmem>>, vector<16x256xbf16>
      tpu.vector_store %arg9[%c0_26, %c0_27], %48 {strides = array<i32>} : memref<16x256xbf16, #tpu.memory_space<vmem>>, vector<16x256xbf16>,
    } else {
    }
    %c256_i32 = arith.constant 256 : i32
    %3 = arith.muli %arg1, %c256_i32 : i32
    %4 = tpu.assume_multiple %3, 256 : i32
    %c0 = arith.constant 0 : index
    %5 = arith.index_cast %4 : i32 to index
    %6 = vector.load %arg8[%c0, %5] : memref<2x256xbf16, #tpu.memory_space<vmem>>, vector<2x256xbf16>
    %c0_1 = arith.constant 0 : index
    %c0_2 = arith.constant 0 : index
    %7 = vector.load %arg7[%c0_1, %c0_2] : memref<256x2xbf16, #tpu.memory_space<vmem>>, vector<256x2xbf16>
    %cst = arith.constant dense<0.000000e+00> : vector<256x256xf32>
    %8 = tpu.matmul %7, %6, %cst {dimension_numbers = #tpu.dot_dimension_numbers<[1], [0], [0], [1], [0, 0, 1, 1], [], []>} : vector<256x2xbf16>, vector<2x256xbf16>, vector<256x256xf32> -> vector<256x256xf32>
    %cst_3 = arith.constant dense<0xFF800000> : vector<256xf32>
    %9 = vector.multi_reduction <maximumf>, %8, %cst_3 [0] : vector<256x256xf32> to vector<256xf32>
    %10 = vector.shape_cast %9 : vector<256xf32> to vector<1x256xf32>
    %11 = vector.broadcast %10 : vector<1x256xf32> to vector<256x256xf32>
    %12 = arith.subf %8, %11 : vector<256x256xf32>
    %13 = math.exp %12 : vector<256x256xf32>
    %cst_4 = arith.constant dense<0.000000e+00> : vector<256xf32>
    %14 = vector.multi_reduction <add>, %13, %cst_4 [0] : vector<256x256xf32> to vector<256xf32>
    %15 = vector.shape_cast %14 : vector<256xf32> to vector<1x256xf32>
    %c0_5 = arith.constant 0 : index
    %c0_6 = arith.constant 0 : index
    %16 = vector.load %arg9[%c0_5, %c0_6] : memref<16x256xbf16, #tpu.memory_space<vmem>>, vector<16x256xbf16>
    %17 = arith.truncf %13 : vector<256x256xf32> to vector<256x256xbf16>
    %cst_7 = arith.constant dense<0.000000e+00> : vector<16x256xf32>
    %18 = tpu.matmul %16, %17, %cst_7 {dimension_numbers = #tpu.dot_dimension_numbers<[1], [0], [0], [1], [0, 0, 1, 1], [], []>} : vector<16x256xbf16>, vector<256x256xbf16>, vector<16x256xf32> -> vector<16x256xf32>
    %19 = tpu.reciprocal %15 {approx = true} : vector<1x256xf32> -> vector<1x256xf32>
    %20 = vector.broadcast %19 : vector<1x256xf32> to vector<16x256xf32>
    %21 = arith.mulf %18, %20 : vector<16x256xf32>
    %c0_8 = arith.constant 0 : index
    %c0_9 = arith.constant 0 : index
    %22 = arith.index_cast %4 : i32 to index
    %23 = vector.load %arg2[%c0_8, %c0_9, %22] : memref<1x16x256xf32, #tpu.memory_space<vmem>>, vector<1x16x256xf32>
    %24 = vector.shape_cast %23 : vector<1x16x256xf32> to vector<16x256xf32>
    %c0_10 = arith.constant 0 : index
    %25 = memref.load %arg5[%c0_10] : memref<1xf32, #tpu.memory_space<smem>>
    %26 = vector.broadcast %25 : f32 to vector<16x256xf32>
    %27 = arith.mulf %26, %21 : vector<16x256xf32>
    %28 = arith.addf %27, %24 : vector<16x256xf32>
    %c0_11 = arith.constant 0 : index
    %c0_12 = arith.constant 0 : index
    %c0_13 = arith.constant 0 : index
    %29 = vector.load %arg6[%c0_11, %c0_12, %c0_13] : memref<1x16x256xf32, #tpu.memory_space<vmem>>, vector<1x16x256xf32>
    %30 = vector.shape_cast %29 : vector<1x16x256xf32> to vector<16x256xf32>
    %31 = vector.shape_cast %28 : vector<16x256xf32> to vector<1x16x256xf32>
    tpu.vector_store %arg6[%c0_11, %c0_12, %c0_13], %31 {strides = array<i32>} : memref<1x16x256xf32, #tpu.memory_space<vmem>>, vector<1x16x256xf32>,
    return
  }
  func.func @transform_0(%arg0: i32, %arg1: i32) -> (i32, i32, i32) {
    %c0_i32 = arith.constant 0 : i32
    %c0_i32_0 = arith.constant 0 : i32
    %c0_i32_1 = arith.constant 0 : i32
    return %arg0, %c0_i32, %c0_i32_0 : i32, i32, i32
  }
  func.func @transform_1(%arg0: i32, %arg1: i32) -> (i32, i32) {
    %c0_i32 = arith.constant 0 : i32
    %c0_i32_0 = arith.constant 0 : i32
    %c0_i32_1 = arith.constant 0 : i32
    return %c0_i32, %c0_i32_0 : i32, i32
  }
  func.func @transform_2(%arg0: i32, %arg1: i32) -> (i32, i32) {
    %c0_i32 = arith.constant 0 : i32
    %c0_i32_0 = arith.constant 0 : i32
    %c0_i32_1 = arith.constant 0 : i32
    return %c0_i32, %c0_i32_0 : i32, i32
  }
  func.func @transform_3(%arg0: i32, %arg1: i32) -> i32 {
    %c0_i32 = arith.constant 0 : i32
    %c0_i32_0 = arith.constant 0 : i32
    return %c0_i32 : i32
  }
  func.func @transform_4(%arg0: i32, %arg1: i32) -> (i32, i32, i32) {
    %c0_i32 = arith.constant 0 : i32
    %c0_i32_0 = arith.constant 0 : i32
    return %arg0, %c0_i32, %arg1 : i32, i32, i32
  }
}

</mosaic_0001>

<bundles_post_ra>
// kernel: tpu_custom_call.1
= control target key start
LH: loop header
LB: loop body
LE: loop exit
PB: predicated region body
PF: predicated region fallthrough
CT: control target
= control target key end

     0   :  { %s2654_s0 = inlined_call_operand.hbm [shape: f32[2,16,256], index: 0, kind: input, shape index: {}]   ;;  %s2655_s1 = inlined_call_operand.vmem [shape: bf16[20,16], index: 1, kind: input, shape index: {}]   ;;  %s2656_s2 = inlined_call_operand.vmem [shape: f32[20,1], index: 2, kind: input, shape index: {}]   ;;  %s2657_s3 = inlined_call_operand.<no memory space> [shape: f32[1], index: 3, kind: input, shape index: {}]   ;;  %s2658_s4 = inlined_call_operand.hbm [shape: f32[2,16,256], index: 4, kind: output, shape index: {}]  }
   0x1   :  { %9 = sst [smem:[#allocation5]] %s2657_s3 }
   0x2   :  { %10 = vsyncpa [#allocation7], 0 }
   0x3   :  { %12 = vsyncpa [#allocation7 + $0x1], 0 }
   0x4   :  { %13 = vsyncpa [#allocation8], 0 }
   0x5   :  { %15 = vsyncpa [#allocation8 + $0x1], 0  ;;  %s1897_s17 = smov 0   ;;  %s1899_s18 = smov 0  }
   0x6   :  { %s1901_s19 = smov 0   ;;  %s1903_s20 = smov 0  }
   0x7   :  { %s1905_s21 = smov 0   ;;  %s1907_s22 = smov 0  }
   0x8 LB: > { %s1396_s3 = sadd.s32 4294967295, %s1862_s22   ;;  %s1397_s23 = sadd.s32 4294967294, %s1862_s22   ;;  %s1862_s22 = sphi %s1907_s22, %s21_s22   ;;  %s1858_s21 = sphi %s1905_s21, %s2725_s21   ;;  %s1854_s20 = sphi %s1903_s20, %s2724_s20   ;;  %s1850_s19 = sphi %s1901_s19, %s2723_s19   ;;  %s1846_s18 = sphi %s1899_s18, %s2722_s18   ;;  %s1842_s17 = sphi %s1897_s17, %s2721_s17  }
   0x9   : > { %s33_s24 = sadd.s32 1, %s1858_s21  ;;  %s40_s25 = sadd.s32 1, %s1850_s19 }
   0xa   : > { %p35_p0 = scmp.ge.s32.totalorder %s33_s24, 2  ;;  %p47_p1 = scmp.ne.s32.totalorder %s1850_s19, %s1846_s18 }
   0xb   : > { %p48_p2 = scmp.eq.s32.totalorder %s1862_s22, 0  ;;  %p53_p3 = scmp.ne.s32.totalorder %s1846_s18, %s1842_s17 }
   0xc   : > { %s2727_s24 = smov (%p35_p0, %s33_s24), 0  ;;  %p54_p5 = scmp.eq.s32.totalorder %s1396_s3, 0 }
   0xd   : > { %p1938_p4 = por %p48_p2, %p47_p1  ;;  %s37_s27 = ssub.s32 %s1858_s21, %s2727_s24 }
   0xe   : > { %p142_p6 = scmp.eq.s32.totalorder %s1396_s3, 1  ;;  %p38_p7 = scmp.eq.s32.totalorder %s37_s27, 0 }
   0xf   : > { %p1944_p8 = por %p54_p5, %p53_p3  ;;  %p148_p10 = scmp.eq.s32.totalorder %s1397_s23, 1 }
  0x10   : > { %p1948_p9 = por %p142_p6, %p47_p1  ;;  %p1399_p12 = scmp.ge.s32.totalorder %s1862_s22, 2 }
  0x11   : > { %s1953_s30 = scalar_select %p38_p7, %s1850_s19, %s40_s25  }
  0x12   : > { %p1955_p11 = por %p148_p10, %p53_p3  ;;  %p1559_p13 = scmp.lt.s32.totalorder %s1862_s22, 2 }
  0x13   : > { %s177_s6 = sand.u32 1, %s1850_s19   ;;  %s1524_s8 = sshll.u32 %s1858_s21, 5 }
  0x14   : > { %s1400_s7 = sshll.u32 %s177_s6, 5  ;;  %s186_s11 = scalar_lea.hbm %s2654_s0, %s1524_s8 }
  0x15   : > { %s181_s12 = scalar_lea.vmem [#allocation6], %s1400_s7  ;;  %s187_s14 = sshll.u32 %s186_s11, 4  ;;  %s188_s14 = int_to_ptr.hbm [resolvable:$true] %s187_s14 }
  0x16   : > { %s189_s13 = sshll.u32 %s181_s12, 4  ;;  %p1552_p0 = pnand %p1559_p13, %p1938_p4  ;;  %s190_s13 = int_to_ptr.vmem [resolvable:$true] %s189_s13 }
  0x17   : > { %p1403_p1 = scmp.ge.s32.totalorder %s1862_s22, 1  ;;  %s178_s15 = scalar_lea.sflag [#allocation7], %s177_s6 }
  0x18   : > { %s1864_s16 = smov 256   ;;  %s1865_s3 = smov 16  }
  0x19   : > { %1554 = dma.hbm_to_vmem [thread:$0]  (!%p1552_p0), %s188_s14, 512, %s190_s13, %s178_s15, %s1864_s16, %s1864_s16, %s1865_s3  }
  0x1a   : > { %p197_p2 = scmp.lt.s32.totalorder %s1862_s22, 3 }
  0x1c   : > { %p198_p3 = pnand %p1403_p1, %p197_p2 }
  0x1e   : > { %201 = sbr.rel (%p198_p3) target bundleno = 1004 (0x3ec), region = 36 }
  0x23   : > { %s1971_s23 = sand.u32 1, %s1846_s18  }
  0x24   : > { %s1404_s25 = sshll.u32 %s1971_s23, 5  ;;  %s204_s27 = scalar_lea.sflag [#allocation7], %s1971_s23 }
  0x25   : > { %s1977_s26 = scalar_lea.vmem [#allocation6], %s1404_s25 }
  0x26   : > { %1833 = dma.done.wait (%p1944_p8), %s204_s27, 512  }
  0x27   : > { %1835 = vsyncadd (%p1944_p8), %s204_s27, 4294966784  ;;  %v1866_v0 = vmov 0   ;;  %v239_v1 = vld [vmem:[%s1977_s26] sm:$0xff]  ;;  %v241_v2 = vld [vmem:[%s1977_s26 + $0x10] sm:$0xff]  ;;  %vm274_vm0 = vcmask 130048   ;;  %vm642_vm1 = vcmask 1040384  }
  0x28   : > { %1615 = vset.pattern.permute.xlu0 %v1866_v0  ;;  %1617 = vset.pattern.permute.xlu2 %v1866_v0  ;;  %v240_v3 = vld [vmem:[%s1977_s26 + $0x8] sm:$0xff]  ;;  %v243_v4 = vpack.c.bf16 %v241_v2, %v239_v1  ;;  %v242_v5 = vld [vmem:[%s1977_s26 + $0x18] sm:$0xff]  ;;  %vm413_vm2 = vcmask 11264   ;;  %vm593_vm3 = vcmask 15360   ;;  %vm458_vm4 = vcmask 1041408   ;;  %s1277_s15 = sld [smem:[#allocation5]] }
  0x29   : > { %v248_v6 = vld [vmem:[%s2656_s2] sm:$0xff]  ;;  %v244_v7 = vpack.c.bf16 %v242_v5, %v240_v3  ;;  %v247_v21 = vld [vmem:[%s2655_s1 + $0x8] sm:$0x3]  ;;  %v250_v46 = vld [vmem:[%s2656_s2 + $0x10] sm:$0xf]  ;;  %vm459_vm5 = vcmask 1045508  }
  0x2a   : > { %v1525_v8 = vld [vmem:[%s2655_s1] sm:$0xff]  ;;  %253 = vperm.xlu0 %1615, %v248_v6   ;;  %288 = vmatpush.bf16.msra.mxu0 %v243_v4  ;;  %v271_v22 = vunpack.c.l.b16 %v247_v21  ;;  %v249_v51 = vld [vmem:[%s2656_s2 + $0x8] sm:$0xff]  ;;  %vm460_vm6 = vmor %vm458_vm4, %vm459_vm5  ;;  %s2606_s16 = scalar_lea.vmem [#allocation9], %s1404_s25  ;;  %s1544_s3 = sshll.u32 %s1854_s20, 5 }
  0x2b   : > { %306 = vmatpush.bf16.msra.mxu1 %v244_v7  ;;  %263 = vperm.xlu2 %1617, %v250_v46   ;;  %s1305_s6 = scalar_lea.hbm %s2658_s4, %s1544_s3  ;;  %s1306_s7 = sshll.u32 %s2606_s16, 4  ;;  %s1307_s7 = int_to_ptr.vmem [resolvable:$true] %s1306_s7 }
  0x2c   : > { %v273_v23 = vpack.c.b16 %v271_v22, %v271_v22  ;;  %s1308_s8 = sshll.u32 %s1305_s6, 4  ;;  %s1292_s28 = scalar_lea.sflag [#allocation8], %s1971_s23  ;;  %s1309_s8 = int_to_ptr.hbm [resolvable:$true] %s1308_s8 }
  0x2d   : > { %1410 = vmatmul.msk.bf16.vlgmr.msra.gmra.mxu0 %vm274_vm0, %v1525_v8  ;;  %s1794_s20 = sshra.s32 %s1309_s8, 4  ;;  %s1800_s12 = scalar_lea.hbm %s2658_s4, 64  ;;  %s1795_s20 = int_to_ptr.hbm [resolvable:$true] %s1794_s20 }
  0x2e   : > { %1412 = vmatmul.msk.bf16.vlgmr.msra.gmra.mxu1 %vm274_vm0, %v1525_v8  ;;  %s1796_s9 = scalar_lea.hbm %s1795_s20, 32  ;;  %p1801_p7 = scmp.lt.s32.totalorder %s1795_s20, %s2658_s4 }
  0x2f   : > { %p1797_p4 = scmp.ne.s32.totalorder %s1795_s20, %s1796_s9  ;;  %p1802_p8 = scmp.lt.s32.totalorder %s1800_s12, %s1796_s9 }
  0x31   : > { %p1798_p5 = pnand %p1797_p4, %p1948_p9  ;;  %p1803_p10 = por %p1802_p8, %p1801_p7 }
  0x33   : > { %p1799_p6 = pneg %p1798_p5 }
  0x35   : > { %p1804_p13 = pnand %p1803_p10, %p1799_p6 }
  0x3d   : > { %1411 = vmatmul.msk.bf16.gmra.mxu0 %vm274_vm0, %v273_v23 }
  0x3e   : > { %1413 = vmatmul.msk.bf16.gmra.mxu1 %vm274_vm0, %v273_v23 }
  0x9c   : > { %v254_v9 = vpop.permute.xlu0 %253 }
  0xaa   : > { %v290_v10 = vpop.f32.mrf.mxu0 }
  0xab   : > { %v291_v11 = vadd.f32 %v290_v10, %v254_v9  ;;  %v308_v12 = vpop.f32.mrf.mxu1 }
  0xac   : > { %v309_v13 = vadd.f32 %v308_v12, %v254_v9 }
  0xad   : > { %317 = vxpose.xlu0.b32.start.end [1/1] (short) %v291_v11, 128 }
  0xae   : > { %v1995_v14 = vpack.c.bf16 %v309_v13, %v291_v11  ;;  %349 = vxpose.xlu1.b32.start.end [1/1] (short) %v309_v13, 128 }
  0xb0   : > { %448 = vst [vmem:[#allocation1] sm:$0xff] %v1995_v14 }
  0xb7   : > { %v450_v15 = vld [vmem:[#allocation1 + $0x1] ss:$4 sm:$0xff] }
  0xb8   : > { %452 = vst [vmem:[#allocation3] sm:$0x3] %v450_v15 }
  0xbf   : > { %v476_v16 = vld [vmem:[#allocation3] sm:$0x3] }
  0xc0   : > { %590 = vst [vmem:[#allocation1] ss:$9 sm:$0xff] %v476_v16  ;;  %v292_v16 = vpop.f32.mrf.mxu0 }
  0xc7   : > { %v591_v17 = vld [vmem:[#allocation1] sm:$0xff]  ;;  %v592_v18 = vld [vmem:[#allocation1 + $0x9] sm:$0xff] }
  0xc8   : > { %v643_v19 = vsel %vm642_vm1, %v591_v17, 0  ;;  %v645_v20 = vsel %vm642_vm1, %v592_v18, 0  ;;  %v310_v17 = vpop.f32.mrf.mxu1  ;;  %v295_v23 = vpop.f32.mrf.mxu0 }
  0xc9   : > { %654 = vmatpush.bf16.msrb.mxu0 %v643_v19  ;;  %1545 = vmatpush.bf16.msra.mxu2 %v643_v19 }
  0xca   : > { %743 = vmatpush.bf16.msrb.mxu1 %v645_v20  ;;  %1546 = vmatpush.bf16.msra.mxu3 %v645_v20 }
 0x101   : > { %1616 = vset.pattern.permute.xlu1 %v1866_v0 }
 0x151   : > { %v333_v24 = vpop.trf.xlu0 }
 0x152   : > { %v381_v25 = vpack.c.bf16 %v333_v24, %v333_v24  ;;  %v365_v26 = vpop.trf.xlu1  ;;  %v313_v24 = vpop.f32.mrf.mxu1 }
 0x153   : > { %v397_v27 = vpack.c.bf16 %v365_v26, %v365_v26 }
 0x154   : > { %414 = vst.msk [vmem:[#allocation2] sm:$0xf] %vm413_vm2, %v381_v25 }
 0x155   : > { %430 = vst.msk [vmem:[#allocation2 + $0x40] sm:$0xf] %vm413_vm2, %v397_v27 }
 0x159   : > { %v334_v28 = vpop.trf.xlu0 }
 0x15a   : > { %v382_v29 = vpack.c.bf16 %v334_v28, %v334_v28  ;;  %v366_v30 = vpop.trf.xlu1 }
 0x15b   : > { %v398_v31 = vpack.c.bf16 %v366_v30, %v366_v30  ;;  %v315_v30 = vpop.f32.mrf.mxu1 }
 0x15c   : > { %415 = vst.msk [vmem:[#allocation2 + $0x4] sm:$0xf] %vm413_vm2, %v382_v29  ;;  %v297_v29 = vpop.f32.mrf.mxu0 }
 0x15d   : > { %431 = vst.msk [vmem:[#allocation2 + $0x44] sm:$0xf] %vm413_vm2, %v398_v31 }
 0x161   : > { %v335_v32 = vpop.trf.xlu0 }
 0x162   : > { %v383_v33 = vpack.c.bf16 %v335_v32, %v335_v32  ;;  %v367_v34 = vpop.trf.xlu1 }
 0x163   : > { %v1526_v35 = vld [vmem:[#allocation2] sm:$0xff]  ;;  %v399_v36 = vpack.c.bf16 %v367_v34, %v367_v34 }
 0x164   : > { %416 = vst.msk [vmem:[#allocation2 + $0x8] sm:$0xf] %vm413_vm2, %v383_v33  ;;  %1479 = vmatmul.msk.bf16.vlgmr.msrb.gmra.mxu0 %vm593_vm3, %v1526_v35  ;;  %1495 = vmatmul.msk.bf16.vlgmr.msrb.gmra.mxu1 %vm593_vm3, %v1526_v35 }
 0x165   : > { %432 = vst.msk [vmem:[#allocation2 + $0x48] sm:$0xf] %vm413_vm2, %v399_v36 }
 0x169   : > { %v336_v37 = vpop.trf.xlu0 }
 0x16a   : > { %v384_v38 = vpack.c.bf16 %v336_v37, %v336_v37  ;;  %v368_v39 = vpop.trf.xlu1 }
 0x16b   : > { %v400_v40 = vpack.c.bf16 %v368_v39, %v368_v39 }
 0x16c   : > { %417 = vst.msk [vmem:[#allocation2 + $0xc] sm:$0xf] %vm413_vm2, %v384_v38 }
 0x16d   : > { %433 = vst.msk [vmem:[#allocation2 + $0x4c] sm:$0xf] %vm413_vm2, %v400_v40 }
 0x171   : > { %v337_v41 = vpop.trf.xlu0 }
 0x172   : > { %v385_v42 = vpack.c.bf16 %v337_v41, %v337_v41  ;;  %v369_v43 = vpop.trf.xlu1  ;;  %v264_v41 = vpop.permute.xlu2 %263 }
 0x173   : > { %v1527_v44 = vld [vmem:[#allocation2 + $0x8] sm:$0xff]  ;;  %v401_v45 = vpack.c.bf16 %v369_v43, %v369_v43  ;;  %v314_v43 = vadd.f32 %v313_v24, %v264_v41 }
 0x174   : > { %418 = vst.msk [vmem:[#allocation2 + $0x10] sm:$0xf] %vm413_vm2, %v385_v42  ;;  %1480 = vmatmul.msk.bf16.gmra.mxu0 %vm593_vm3, %v1527_v44  ;;  %1496 = vmatmul.msk.bf16.gmra.mxu1 %vm593_vm3, %v1527_v44  ;;  %v296_v42 = vadd.f32 %v295_v23, %v264_v41 }
 0x175   : > { %434 = vst.msk [vmem:[#allocation2 + $0x50] sm:$0xf] %vm413_vm2, %v401_v45  ;;  %v1534_v45 = vld [vmem:[#allocation2 + $0x40] sm:$0xff] }
 0x176   : > { %v454_v44 = vpack.c.bf16 %v314_v43, %v296_v42 }
 0x179   : > { %v338_v47 = vpop.trf.xlu0 }
 0x17a   : > { %v386_v48 = vpack.c.bf16 %v338_v47, %v338_v47  ;;  %v370_v49 = vpop.trf.xlu1 }
 0x17b   : > { %v402_v50 = vpack.c.bf16 %v370_v49, %v370_v49  ;;  %v1535_v49 = vld [vmem:[#allocation2 + $0x48] sm:$0xff] }
 0x17c   : > { %419 = vst.msk [vmem:[#allocation2 + $0x14] sm:$0xf] %vm413_vm2, %v386_v48 }
 0x17d   : > { %435 = vst.msk [vmem:[#allocation2 + $0x54] sm:$0xf] %vm413_vm2, %v402_v50 }
 0x180   : > { %258 = vperm.xlu1 %1616, %v249_v51   ;;  %v1414_v51 = vrot.slane %v1995_v14, 10 }
 0x181   : > { %v339_v52 = vpop.trf.xlu0 }
 0x182   : > { %v387_v53 = vpack.c.bf16 %v339_v52, %v339_v52  ;;  %v371_v54 = vpop.trf.xlu1 }
 0x183   : > { %v1528_v55 = vld [vmem:[#allocation2 + $0x10] sm:$0xff]  ;;  %v403_v56 = vpack.c.bf16 %v371_v54, %v371_v54 }
 0x184   : > { %420 = vst.msk [vmem:[#allocation2 + $0x18] sm:$0xf] %vm413_vm2, %v387_v53  ;;  %1481 = vmatmul.msk.bf16.gmra.mxu0 %vm593_vm3, %v1528_v55  ;;  %1497 = vmatmul.msk.bf16.gmra.mxu1 %vm593_vm3, %v1528_v55  ;;  %v466_v53 = vrot.slane %v454_v44, 6 }
 0x185   : > { %436 = vst.msk [vmem:[#allocation2 + $0x58] sm:$0xf] %vm413_vm2, %v403_v56 }
 0x189   : > { %v340_v57 = vpop.trf.xlu0 }
 0x18a   : > { %v388_v58 = vpack.c.bf16 %v340_v57, %v340_v57  ;;  %v372_v59 = vpop.trf.xlu1  ;;  %v1536_v57 = vld [vmem:[#allocation2 + $0x50] sm:$0xff] }
 0x18b   : > { %v404_v60 = vpack.c.bf16 %v372_v59, %v372_v59 }
 0x18c   : > { %421 = vst.msk [vmem:[#allocation2 + $0x1c] sm:$0xf] %vm413_vm2, %v388_v58 }
 0x18d   : > { %437 = vst.msk [vmem:[#allocation2 + $0x5c] sm:$0xf] %vm413_vm2, %v404_v60 }
 0x191   : > { %v341_v61 = vpop.trf.xlu0 }
 0x192   : > { %v389_v62 = vpack.c.bf16 %v341_v61, %v341_v61  ;;  %v373_v63 = vpop.trf.xlu1 }
 0x193   : > { %v1529_v0 = vld [vmem:[#allocation2 + $0x18] sm:$0xff]  ;;  %v405_v1 = vpack.c.bf16 %v373_v63, %v373_v63 }
 0x194   : > { %422 = vst.msk [vmem:[#allocation2 + $0x20] sm:$0xf] %vm413_vm2, %v389_v62  ;;  %1482 = vmatmul.msk.bf16.gmra.mxu0 %vm593_vm3, %v1529_v0  ;;  %1498 = vmatmul.msk.bf16.gmra.mxu1 %vm593_vm3, %v1529_v0  ;;  %v1537_v58 = vld [vmem:[#allocation2 + $0x58] sm:$0xff] }
 0x195   : > { %438 = vst.msk [vmem:[#allocation2 + $0x60] sm:$0xf] %vm413_vm2, %v405_v1 }
 0x199   : > { %v342_v2 = vpop.trf.xlu0 }
 0x19a   : > { %v390_v3 = vpack.c.bf16 %v342_v2, %v342_v2  ;;  %v374_v4 = vpop.trf.xlu1 }
 0x19b   : > { %v406_v5 = vpack.c.bf16 %v374_v4, %v374_v4 }
 0x19c   : > { %423 = vst.msk [vmem:[#allocation2 + $0x24] sm:$0xf] %vm413_vm2, %v390_v3 }
 0x19d   : > { %439 = vst.msk [vmem:[#allocation2 + $0x64] sm:$0xf] %vm413_vm2, %v406_v5 }
 0x1a1   : > { %v343_v6 = vpop.trf.xlu0 }
 0x1a2   : > { %v391_v7 = vpack.c.bf16 %v343_v6, %v343_v6  ;;  %v375_v8 = vpop.trf.xlu1 }
 0x1a3   : > { %v1530_v9 = vld [vmem:[#allocation2 + $0x20] sm:$0xff]  ;;  %v407_v10 = vpack.c.bf16 %v375_v8, %v375_v8 }
 0x1a4   : > { %424 = vst.msk [vmem:[#allocation2 + $0x28] sm:$0xf] %vm413_vm2, %v391_v7  ;;  %1483 = vmatmul.msk.bf16.gmra.mxu0 %vm593_vm3, %v1530_v9  ;;  %1499 = vmatmul.msk.bf16.gmra.mxu1 %vm593_vm3, %v1530_v9  ;;  %v1538_v59 = vld [vmem:[#allocation2 + $0x60] sm:$0xff] }
 0x1a5   : > { %440 = vst.msk [vmem:[#allocation2 + $0x68] sm:$0xf] %vm413_vm2, %v407_v10 }
 0x1a9   : > { %v344_v11 = vpop.trf.xlu0 }
 0x1aa   : > { %v392_v12 = vpack.c.bf16 %v344_v11, %v344_v11  ;;  %v376_v13 = vpop.trf.xlu1 }
 0x1ab   : > { %v408_v15 = vpack.c.bf16 %v376_v13, %v376_v13 }
 0x1ac   : > { %425 = vst.msk [vmem:[#allocation2 + $0x2c] sm:$0xf] %vm413_vm2, %v392_v12 }
 0x1ad   : > { %441 = vst.msk [vmem:[#allocation2 + $0x6c] sm:$0xf] %vm413_vm2, %v408_v15 }
 0x1b1   : > { %v345_v18 = vpop.trf.xlu0 }
 0x1b2   : > { %v393_v19 = vpack.c.bf16 %v345_v18, %v345_v18  ;;  %v377_v20 = vpop.trf.xlu1 }
 0x1b3   : > { %v1531_v21 = vld [vmem:[#allocation2 + $0x28] sm:$0xff]  ;;  %v409_v22 = vpack.c.bf16 %v377_v20, %v377_v20 }
 0x1b4   : > { %426 = vst.msk [vmem:[#allocation2 + $0x30] sm:$0xf] %vm413_vm2, %v393_v19  ;;  %1484 = vmatmul.msk.bf16.vlgmr.msra.gmra.mxu2 %vm593_vm3, %v1531_v21  ;;  %1500 = vmatmul.msk.bf16.vlgmr.msra.gmra.mxu3 %vm593_vm3, %v1531_v21  ;;  %v1539_v14 = vld [vmem:[#allocation2 + $0x68] sm:$0xff] }
 0x1b5   : > { %442 = vst.msk [vmem:[#allocation2 + $0x70] sm:$0xf] %vm413_vm2, %v409_v22 }
 0x1b9   : > { %v346_v25 = vpop.trf.xlu0 }
 0x1ba   : > { %v394_v26 = vpack.c.bf16 %v346_v25, %v346_v25  ;;  %v378_v27 = vpop.trf.xlu1 }
 0x1bb   : > { %v410_v28 = vpack.c.bf16 %v378_v27, %v378_v27 }
 0x1bc   : > { %427 = vst.msk [vmem:[#allocation2 + $0x34] sm:$0xf] %vm413_vm2, %v394_v26 }
 0x1bd   : > { %443 = vst.msk [vmem:[#allocation2 + $0x74] sm:$0xf] %vm413_vm2, %v410_v28 }
 0x1c1   : > { %v347_v31 = vpop.trf.xlu0 }
 0x1c2   : > { %v395_v32 = vpack.c.bf16 %v347_v31, %v347_v31  ;;  %v379_v33 = vpop.trf.xlu1 }
 0x1c3   : > { %v1532_v34 = vld [vmem:[#allocation2 + $0x30] sm:$0xff]  ;;  %v411_v35 = vpack.c.bf16 %v379_v33, %v379_v33 }
 0x1c4   : > { %428 = vst.msk [vmem:[#allocation2 + $0x38] sm:$0xf] %vm413_vm2, %v395_v32  ;;  %1485 = vmatmul.msk.bf16.gmra.mxu2 %vm593_vm3, %v1532_v34  ;;  %1501 = vmatmul.msk.bf16.gmra.mxu3 %vm593_vm3, %v1532_v34  ;;  %v1540_v0 = vld [vmem:[#allocation2 + $0x70] sm:$0xff] }
 0x1c5   : > { %444 = vst.msk [vmem:[#allocation2 + $0x78] sm:$0xf] %vm413_vm2, %v411_v35 }
 0x1c9   : > { %v348_v36 = vpop.trf.xlu0 }
 0x1ca   : > { %v396_v37 = vpack.c.bf16 %v348_v36, %v348_v36  ;;  %v380_v38 = vpop.trf.xlu1 }
 0x1cb   : > { %v412_v39 = vpack.c.bf16 %v380_v38, %v380_v38 }
 0x1cc   : > { %429 = vst.msk [vmem:[#allocation2 + $0x3c] sm:$0xf] %vm413_vm2, %v396_v37 }
 0x1cd   : > { %445 = vst.msk [vmem:[#allocation2 + $0x7c] sm:$0xf] %vm413_vm2, %v412_v39 }
 0x1d3   : > { %v1533_v40 = vld [vmem:[#allocation2 + $0x38] sm:$0xff] }
 0x1d4   : > { %1486 = vmatmul.msk.bf16.gmra.mxu2 %vm593_vm3, %v1533_v40  ;;  %1502 = vmatmul.msk.bf16.gmra.mxu3 %vm593_vm3, %v1533_v40  ;;  %v1541_v5 = vld [vmem:[#allocation2 + $0x78] sm:$0xff] }
 0x1e1   : > { %v2102_v12 = vpop.f32.mrf.mxu0  ;;  %v2114_v19 = vpop.f32.mrf.mxu1 }
 0x1e4   : > { %1487 = vmatmul.msk.bf16.gmra.mxu2 %vm593_vm3, %v1534_v45  ;;  %1503 = vmatmul.msk.bf16.gmra.mxu3 %vm593_vm3, %v1534_v45 }
 0x1e9   : > { %v2126_v25 = vpop.f32.mrf.mxu1 }
 0x1ea   : > { %2687 = vst [vmem:[#allocation17_spill] sm:$0xff] %v2126_v25 }
 0x1f1   : > { %v2134_v29 = vpop.f32.mrf.mxu1 }
 0x1f2   : > { %v259_v46 = vpop.permute.xlu1 %258  ;;  %2689 = vst [vmem:[#allocation19_spill] sm:$0xff] %v2134_v29 }
 0x1f3   : > { %v293_v47 = vadd.f32 %v292_v16, %v259_v46  ;;  %v311_v48 = vadd.f32 %v310_v17, %v259_v46  ;;  %v2108_v16 = vpop.f32.mrf.mxu0 }
 0x1f4   : > { %1488 = vmatmul.msk.bf16.gmra.mxu2 %vm593_vm3, %v1535_v49  ;;  %1504 = vmatmul.msk.bf16.gmra.mxu3 %vm593_vm3, %v1535_v49 }
 0x1f5   : > { %v453_v50 = vpack.c.bf16 %v311_v48, %v293_v47 }
 0x1f7   : > { %v463_v52 = vrot.slane %v453_v50, 6 }
 0x1f9   : > { %v464_v54 = vsel %vm460_vm6, %v1414_v51, %v463_v52  ;;  %v465_v55 = vrot.slane %v463_v52, 4  ;;  %v2142_v33 = vpop.f32.mrf.mxu1 }
 0x1fa   : > { %470 = vst [vmem:[#allocation4] sm:$0xff] %v464_v54 }
 0x1fb   : > { %v467_v56 = vsel %vm460_vm6, %v465_v55, %v466_v53  ;;  %v2120_v22 = vpop.f32.mrf.mxu0  ;;  %2691 = vst [vmem:[#allocation21_spill] sm:$0xff] %v2142_v33 }
 0x1fc   : > { %471 = vst [vmem:[#allocation4 + $0x8] sm:$0xff] %v467_v56  ;;  %v825_v50 = vmax.f32 %v2102_v12, %v2120_v22 }
 0x201   : > { %v2150_v37 = vpop.f32.mrf.mxu1 }
 0x203   : > { %v2128_v26 = vpop.f32.mrf.mxu0 }
 0x204   : > { %1489 = vmatmul.msk.bf16.gmra.mxu2 %vm593_vm3, %v1536_v57  ;;  %1505 = vmatmul.msk.bf16.gmra.mxu3 %vm593_vm3, %v1536_v57  ;;  %2688 = vst [vmem:[#allocation18_spill] sm:$0xff] %v2128_v26  ;;  %v826_v51 = vmax.f32 %v2108_v16, %v2128_v26 }
 0x209   : > { %v2160_v42 = vpop.f32.mrf.mxu1 }
 0x20b   : > { %v2136_v30 = vpop.f32.mrf.mxu0 }
 0x20c   : > { %2690 = vst [vmem:[#allocation20_spill] sm:$0xff] %v2136_v30  ;;  %v827_v53 = vmax.f32 %v825_v50, %v2136_v30 }
 0x211   : > { %v2168_v46 = vpop.f32.mrf.mxu1 }
 0x213   : > { %v2144_v34 = vpop.f32.mrf.mxu0 }
 0x214   : > { %1490 = vmatmul.msk.bf16.gmra.mxu2 %vm593_vm3, %v1537_v58  ;;  %1506 = vmatmul.msk.bf16.gmra.mxu3 %vm593_vm3, %v1537_v58  ;;  %2692 = vst [vmem:[#allocation22_spill] sm:$0xff] %v2144_v34  ;;  %v828_v54 = vmax.f32 %v826_v51, %v2144_v34 }
 0x219   : > { %v2180_v52 = vpop.f32.mrf.mxu1 }
 0x21a   : > { %2697 = vst [vmem:[#allocation27_spill] sm:$0xff] %v2180_v52 }
 0x21b   : > { %v2154_v39 = vpop.f32.mrf.mxu0 }
 0x21c   : > { %v829_v58 = vmax.f32 %v827_v53, %v2154_v39 }
 0x221   : > { %v2198_v30 = vpop.f32.mrf.mxu1 }
 0x223   : > { %v2162_v43 = vpop.f32.mrf.mxu0 }
 0x224   : > { %1491 = vmatmul.msk.bf16.gmra.mxu2 %vm593_vm3, %v1538_v59  ;;  %1507 = vmatmul.msk.bf16.gmra.mxu3 %vm593_vm3, %v1538_v59  ;;  %2695 = vst [vmem:[#allocation25_spill] sm:$0xff] %v2162_v43  ;;  %v830_v59 = vmax.f32 %v828_v54, %v2162_v43 }
 0x22b   : > { %v2170_v47 = vpop.f32.mrf.mxu0 }
 0x233   : > { %v2184_v55 = vpop.f32.mrf.mxu0 }
 0x234   : > { %1492 = vmatmul.msk.bf16.gmra.mxu2 %vm593_vm3, %v1539_v14  ;;  %1508 = vmatmul.msk.bf16.gmra.mxu3 %vm593_vm3, %v1539_v14  ;;  %v831_v14 = vmax.f32 %v829_v58, %v2170_v47 }
 0x237   : > { %v2070_v60 = vpop.f32.mrf.mxu2  ;;  %v2072_v61 = vpop.f32.mrf.mxu3 }
 0x23f   : > { %v2074_v62 = vpop.f32.mrf.mxu2  ;;  %v2076_v63 = vpop.f32.mrf.mxu3 }
 0x240   : > { %2682 = vst [vmem:[#allocation12_spill] sm:$0xff] %v2076_v63 }
 0x244   : > { %1493 = vmatmul.msk.bf16.gmra.mxu2 %vm593_vm3, %v1540_v0  ;;  %1509 = vmatmul.msk.bf16.gmra.mxu3 %vm593_vm3, %v1540_v0  ;;  %v832_v0 = vmax.f32 %v830_v59, %v2184_v55 }
 0x246   : > { %v834_v50 = vmax.f32 %v832_v0, %v2074_v62 }
 0x247   : > { %v2080_v1 = vpop.f32.mrf.mxu2  ;;  %v2082_v2 = vpop.f32.mrf.mxu3 }
 0x24f   : > { %v2084_v3 = vpop.f32.mrf.mxu2  ;;  %v2086_v4 = vpop.f32.mrf.mxu3 }
 0x250   : > { %2683 = vst [vmem:[#allocation13_spill] sm:$0xff] %v2084_v3  ;;  %v836_v34 = vmax.f32 %v834_v50, %v2084_v3 }
 0x251   : > { %2684 = vst [vmem:[#allocation14_spill] sm:$0xff] %v2086_v4 }
 0x254   : > { %1494 = vmatmul.msk.bf16.gmra.mxu2 %vm593_vm3, %v1541_v5  ;;  %1510 = vmatmul.msk.bf16.gmra.mxu3 %vm593_vm3, %v1541_v5  ;;  %v833_v5 = vmax.f32 %v831_v14, %v2070_v60 }
 0x256   : > { %v835_v51 = vmax.f32 %v833_v5, %v2080_v1  ;;  %v863_v5 = vmax.f32 %v2126_v25, %v2142_v33 }
 0x257   : > { %v2090_v6 = vpop.f32.mrf.mxu2  ;;  %v2092_v7 = vpop.f32.mrf.mxu3 }
 0x258   : > { %v837_v53 = vmax.f32 %v835_v51, %v2090_v6 }
 0x25f   : > { %v2094_v8 = vpop.f32.mrf.mxu2  ;;  %v2096_v9 = vpop.f32.mrf.mxu3 }
 0x260   : > { %v838_v54 = vmax.f32 %v836_v34, %v2094_v8  ;;  %v862_v34 = vmax.f32 %v2114_v19, %v2134_v29 }
 0x267   : > { %v2098_v10 = vpop.f32.mrf.mxu2  ;;  %v2100_v11 = vpop.f32.mrf.mxu3 }
 0x268   : > { %v839_v58 = vmax.f32 %v837_v53, %v2098_v10  ;;  %v865_v53 = vmax.f32 %v863_v5, %v2160_v42 }
 0x26a   : > { %v867_v33 = vmax.f32 %v865_v53, %v2180_v52 }
 0x26f   : > { %v2104_v13 = vpop.f32.mrf.mxu2  ;;  %v2106_v15 = vpop.f32.mrf.mxu3 }
 0x270   : > { %2685 = vst [vmem:[#allocation15_spill] sm:$0xff] %v2106_v15  ;;  %v840_v59 = vmax.f32 %v838_v54, %v2104_v13 }
 0x277   : > { %v2110_v17 = vpop.f32.mrf.mxu2  ;;  %v2112_v18 = vpop.f32.mrf.mxu3 }
 0x278   : > { %2686 = vst [vmem:[#allocation16_spill] sm:$0xff] %v2110_v17  ;;  %v841_v14 = vmax.f32 %v839_v58, %v2110_v17  ;;  %v2221_v17 = vpop.f32.mrf.mxu1 }
 0x279   : > { %2698 = vst [vmem:[#allocation28_spill] sm:$0xff] %v2221_v17  ;;  %v869_v5 = vmax.f32 %v867_v33, %v2221_v17 }
 0x27f   : > { %v2116_v20 = vpop.f32.mrf.mxu2  ;;  %v2118_v21 = vpop.f32.mrf.mxu3 }
 0x280   : > { %v842_v0 = vmax.f32 %v840_v59, %v2116_v20  ;;  %v864_v59 = vmax.f32 %v862_v34, %v2150_v37  ;;  %v871_v34 = vmax.f32 %v869_v5, %v2076_v63 }
 0x282   : > { %v866_v29 = vmax.f32 %v864_v59, %v2168_v46  ;;  %v873_v59 = vmax.f32 %v871_v34, %v2086_v4 }
 0x287   : > { %v2122_v23 = vpop.f32.mrf.mxu2  ;;  %v2124_v24 = vpop.f32.mrf.mxu3 }
 0x288   : > { %v843_v50 = vmax.f32 %v841_v14, %v2122_v23 }
 0x28f   : > { %v2130_v27 = vpop.f32.mrf.mxu2  ;;  %v2132_v28 = vpop.f32.mrf.mxu3 }
 0x290   : > { %v844_v3 = vmax.f32 %v842_v0, %v2130_v27 }
 0x297   : > { %v2138_v31 = vpop.f32.mrf.mxu2  ;;  %v2140_v32 = vpop.f32.mrf.mxu3 }
 0x298   : > { %v845_v54 = vmax.f32 %v843_v50, %v2138_v31 }
 0x29f   : > { %v2146_v35 = vpop.f32.mrf.mxu2  ;;  %v2148_v36 = vpop.f32.mrf.mxu3 }
 0x2a0   : > { %2693 = vst [vmem:[#allocation23_spill] sm:$0xff] %v2146_v35  ;;  %v846_v58 = vmax.f32 %v844_v3, %v2146_v35  ;;  %v868_v35 = vmax.f32 %v866_v29, %v2198_v30  ;;  %v875_v29 = vmax.f32 %v873_v59, %v2096_v9 }
 0x2a1   : > { %2694 = vst [vmem:[#allocation24_spill] sm:$0xff] %v2148_v36 }
 0x2a7   : > { %v2152_v38 = vpop.f32.mrf.mxu2  ;;  %v2156_v40 = vpop.f32.mrf.mxu3 }
 0x2a8   : > { %v847_v14 = vmax.f32 %v845_v54, %v2152_v38 }
 0x2af   : > { %v2158_v41 = vpop.f32.mrf.mxu2  ;;  %v2164_v44 = vpop.f32.mrf.mxu3 }
 0x2b0   : > { %2696 = vst [vmem:[#allocation26_spill] sm:$0xff] %v2164_v44  ;;  %v848_v0 = vmax.f32 %v846_v58, %v2158_v41  ;;  %v870_v58 = vmax.f32 %v868_v35, %v2072_v61 }
 0x2b7   : > { %v2166_v45 = vpop.f32.mrf.mxu2  ;;  %v2172_v48 = vpop.f32.mrf.mxu3 }
 0x2b8   : > { %v849_v50 = vmax.f32 %v847_v14, %v2166_v45 }
 0x2bf   : > { %v2174_v49 = vpop.f32.mrf.mxu2  ;;  %v2186_v56 = vpop.f32.mrf.mxu3 }
 0x2c0   : > { %v850_v3 = vmax.f32 %v848_v0, %v2174_v49  ;;  %v872_v0 = vmax.f32 %v870_v58, %v2082_v2 }
 0x2c2   : > { %v874_v5 = vmax.f32 %v872_v0, %v2092_v7 }
 0x2c4   : > { %v876_v35 = vmax.f32 %v874_v5, %v2100_v11 }
 0x2c7   : > { %v2188_v57 = vpop.f32.mrf.mxu2  ;;  %v2204_v43 = vpop.f32.mrf.mxu3 }
 0x2c8   : > { %v851_v53 = vmax.f32 %v849_v50, %v2188_v57  ;;  %v877_v50 = vmax.f32 %v875_v29, %v2106_v15 }
 0x2ca   : > { %v879_v34 = vmax.f32 %v877_v50, %v2118_v21 }
 0x2cf   : > { %v2200_v26 = vpop.f32.mrf.mxu2  ;;  %v2227_v25 = vpop.f32.mrf.mxu3 }
 0x2d0   : > { %v852_v54 = vmax.f32 %v850_v3, %v2200_v26 }
 0x2d7   : > { %v2214_v51 = vpop.f32.mrf.mxu2  ;;  %v2247_v63 = vpop.f32.mrf.mxu3 }
 0x2d8   : > { %v853_v33 = vmax.f32 %v851_v53, %v2214_v51  ;;  %v878_v53 = vmax.f32 %v876_v35, %v2112_v18 }
 0x2da   : > { %v880_v59 = vmax.f32 %v878_v53, %v2124_v24 }
 0x2dc   : > { %v882_v0 = vmax.f32 %v880_v59, %v2140_v32 }
 0x2de   : > { %v884_v5 = vmax.f32 %v882_v0, %v2156_v40 }
 0x2df   : > { %v2237_v52 = vpop.f32.mrf.mxu2 }
 0x2e0   : > { %v854_v14 = vmax.f32 %v852_v54, %v2237_v52  ;;  %v881_v54 = vmax.f32 %v879_v34, %v2132_v28 }
 0x2e2   : > { %v855_v17 = vmax.f32 %v853_v33, %v854_v14  ;;  %v883_v33 = vmax.f32 %v881_v54, %v2148_v36 }
 0x2e4   : > { %v856_v3 = vrot.slane %v855_v17, 4  ;;  %v885_v29 = vmax.f32 %v883_v33, %v2164_v44 }
 0x2e6   : > { %v857_v4 = vmax.f32 %v855_v17, %v856_v3  ;;  %v887_v50 = vmax.f32 %v885_v29, %v2186_v56  ;;  %v2259_v17 = vpop.f32.mrf.mxu3  ;;  %v886_v3 = vmax.f32 %v884_v5, %v2172_v48  ;;  %v2699_v29 = vld [vmem:[#allocation18_spill] sm:$0xff] }
 0x2e8   : > { %v858_v58 = vrot.slane %v857_v4, 2  ;;  %v889_v35 = vmax.f32 %v887_v50, %v2227_v25  ;;  %v888_v53 = vmax.f32 %v886_v3, %v2204_v43  ;;  %v2700_v50 = vld [vmem:[#allocation20_spill] sm:$0xff] }
 0x2ea   : > { %v859_v14 = vmax.f32 %v857_v4, %v858_v58  ;;  %v891_v4 = vmax.f32 %v889_v35, %v2259_v17  ;;  %v890_v54 = vmax.f32 %v888_v53, %v2247_v63 }
 0x2ec   : > { %v860_v15 = vrot.slane %v859_v14, 1  ;;  %v892_v0 = vmax.f32 %v890_v54, %v891_v4 }
 0x2ee   : > { %v2263_v34 = vmax.f32 %v859_v14, %v860_v15  ;;  %v893_v53 = vrot.slane %v892_v0, 4 }
 0x2f0   : > { %v899_v58 = vsub.f32 %v2102_v12, %v2263_v34  ;;  %v901_v59 = vsub.f32 %v2108_v16, %v2263_v34  ;;  %v903_v33 = vsub.f32 %v2120_v22, %v2263_v34  ;;  %v905_v15 = vsub.f32 %v2699_v29, %v2263_v34  ;;  %v2701_v12 = vld [vmem:[#allocation22_spill] sm:$0xff] }
 0x2f1   : > { %v907_v3 = vsub.f32 %v2700_v50, %v2263_v34  ;;  %v909_v36 = vsub.f32 %v2701_v12, %v2263_v34  ;;  %v911_v22 = vsub.f32 %v2154_v39, %v2263_v34  ;;  %v894_v54 = vmax.f32 %v892_v0, %v893_v53 }
 0x2f2   : > { %v963_v14 = vmul.f32 1.442695, %v899_v58  ;;  %v967_v5 = vmul.f32 1.442695, %v901_v59  ;;  %v971_v35 = vmul.f32 1.442695, %v903_v33  ;;  %v915_v33 = vsub.f32 %v2170_v47, %v2263_v34 }
 0x2f3   : > { %v975_v16 = vmul.f32 1.442695, %v905_v15  ;;  %v979_v4 = vmul.f32 1.442695, %v907_v3  ;;  %v2702_v58 = vld [vmem:[#allocation25_spill] sm:$0xff]  ;;  %v917_v15 = vsub.f32 %v2184_v55, %v2263_v34  ;;  %v919_v0 = vsub.f32 %v2070_v60, %v2263_v34 }
 0x2f4   : > { %1618 = vpow2.f32 %v963_v14  ;;  %v913_v59 = vsub.f32 %v2702_v58, %v2263_v34  ;;  %v983_v29 = vmul.f32 1.442695, %v909_v36  ;;  %v987_v39 = vmul.f32 1.442695, %v911_v22  ;;  %v2705_v60 = vld [vmem:[#allocation13_spill] sm:$0xff] }
 0x2f5   : > { %1620 = vpow2.f32 %v967_v5  ;;  %v895_v3 = vrot.slane %v894_v54, 2  ;;  %v923_v53 = vsub.f32 %v2080_v1, %v2263_v34  ;;  %v995_v55 = vmul.f32 1.442695, %v915_v33 }
 0x2f6   : > { %1622 = vpow2.f32 %v971_v35  ;;  %v921_v35 = vsub.f32 %v2074_v62, %v2263_v34  ;;  %v991_v47 = vmul.f32 1.442695, %v913_v59  ;;  %v925_v22 = vsub.f32 %v2705_v60, %v2263_v34 }
 0x2f7   : > { %1624 = vpow2.f32 %v975_v16  ;;  %v927_v58 = vsub.f32 %v2090_v6, %v2263_v34  ;;  %v896_v59 = vmax.f32 %v894_v54, %v895_v3  ;;  %v929_v1 = vsub.f32 %v2094_v8, %v2263_v34  ;;  %v2706_v54 = vld [vmem:[#allocation16_spill] sm:$0xff] }
 0x2f8   : > { %1626 = vpow2.f32 %v979_v4  ;;  %v999_v4 = vmul.f32 1.442695, %v917_v15  ;;  %v1007_v33 = vmul.f32 1.442695, %v921_v35  ;;  %v933_v6 = vsub.f32 %v2104_v13, %v2263_v34 }
 0x2f9   : > { %1628 = vpow2.f32 %v983_v29  ;;  %v1015_v3 = vmul.f32 1.442695, %v925_v22  ;;  %v1019_v8 = vmul.f32 1.442695, %v927_v58  ;;  %v939_v13 = vsub.f32 %v2122_v23, %v2263_v34 }
 0x2fa   : > { %v2284_v50 = vpop.eup %1618  ;;  %1630 = vpow2.f32 %v987_v39  ;;  %v1011_v39 = vmul.f32 1.442695, %v923_v53  ;;  %v937_v53 = vsub.f32 %v2116_v20, %v2263_v34  ;;  %v943_v58 = vsub.f32 %v2138_v31, %v2263_v34 }
 0x2fb   : > { %2703 = vst [vmem:[#allocation18_spill] sm:$0xff] %v2284_v50  ;;  %v2288_v14 = vpop.eup %1620  ;;  %1632 = vpow2.f32 %v991_v47  ;;  %v897_v47 = vrot.slane %v896_v59, 1  ;;  %v959_v31 = vsub.f32 %v2214_v51, %v2263_v34 }
 0x2fc   : > { %2704 = vst [vmem:[#allocation20_spill] sm:$0xff] %v2288_v14  ;;  %v1091_v5 = vadd.f32 %v2288_v14, %v2284_v50  ;;  %v2296_v36 = vpop.eup %1622  ;;  %v1003_v14 = vmul.f32 1.442695, %v919_v0  ;;  %1634 = vpow2.f32 %v995_v55  ;;  %v935_v0 = vsub.f32 %v2706_v54, %v2263_v34 }
 0x2fd   : > { %v2303_v16 = vpop.eup %1624  ;;  %1636 = vpow2.f32 %v999_v4  ;;  %v1023_v55 = vmul.f32 1.442695, %v929_v1 }
 0x2fe   : > { %v1092_v12 = vadd.f32 %v2296_v36, %v1091_v5  ;;  %v2310_v29 = vpop.eup %1626  ;;  %v931_v5 = vsub.f32 %v2098_v10, %v2263_v34  ;;  %1638 = vpow2.f32 %v1003_v14  ;;  %v941_v14 = vsub.f32 %v2130_v27, %v2263_v34 }
 0x2ff   : > { %v2317_v60 = vpop.eup %1628  ;;  %1640 = vpow2.f32 %v1007_v33  ;;  %v1035_v1 = vmul.f32 1.442695, %v935_v0  ;;  %v2340_v33 = vmax.f32 %v896_v59, %v897_v47  ;;  %v1039_v27 = vmul.f32 1.442695, %v937_v53 }
 0x300   : > { %v1093_v62 = vadd.f32 %v2303_v16, %v1092_v12  ;;  %v2324_v10 = vpop.eup %1630  ;;  %1642 = vpow2.f32 %v1011_v39  ;;  %v1027_v12 = vmul.f32 1.442695, %v931_v5  ;;  %v955_v39 = vsub.f32 %v2188_v57, %v2263_v34 }
 0x301   : > { %v2331_v22 = vpop.eup %1632  ;;  %1644 = vpow2.f32 %v1015_v3  ;;  %v961_v59 = vsub.f32 %v2237_v52, %v2263_v34  ;;  %v1047_v3 = vmul.f32 1.442695, %v941_v14  ;;  %v1051_v57 = vmul.f32 1.442695, %v943_v58 }
 0x302   : > { %v1094_v15 = vadd.f32 %v2310_v29, %v1093_v62  ;;  %v1031_v62 = vmul.f32 1.442695, %v933_v6  ;;  %v2337_v20 = vpop.eup %1634  ;;  %1646 = vpow2.f32 %v1019_v8  ;;  %v1043_v6 = vmul.f32 1.442695, %v939_v13 }
 0x303   : > { %v2342_v5 = vpop.eup %1636  ;;  %1648 = vpow2.f32 %v1023_v55  ;;  %v900_v51 = vsub.f32 %v2114_v19, %v2340_v33  ;;  %v1075_v53 = vmul.f32 1.442695, %v955_v39  ;;  %v2707_v55 = vld [vmem:[#allocation17_spill] sm:$0xff]  ;;  %v957_v52 = vsub.f32 %v2200_v26, %v2263_v34 }
 0x304   : > { %v1095_v35 = vadd.f32 %v2317_v60, %v1094_v15  ;;  %v2346_v15 = vpop.eup %1638  ;;  %1650 = vpow2.f32 %v1027_v12  ;;  %v902_v13 = vsub.f32 %v2707_v55, %v2340_v33  ;;  %v1087_v19 = vmul.f32 1.442695, %v961_v59 }
 0x305   : > { %v2351_v0 = vpop.eup %1640  ;;  %1652 = vpow2.f32 %v1031_v62  ;;  %v2708_v62 = vld [vmem:[#allocation19_spill] sm:$0xff]  ;;  %v951_v39 = vsub.f32 %v2166_v45, %v2263_v34  ;;  %v965_v26 = vmul.f32 1.442695, %v900_v51  ;;  %v1079_v55 = vmul.f32 1.442695, %v957_v52 }
 0x306   : > { %v1096_v4 = vadd.f32 %v2324_v10, %v1095_v35  ;;  %v2355_v8 = vpop.eup %1642  ;;  %1654 = vpow2.f32 %v1035_v1  ;;  %v904_v1 = vsub.f32 %v2708_v62, %v2340_v33  ;;  %v908_v51 = vsub.f32 %v2150_v37, %v2340_v33 }
 0x307   : > { %v2360_v47 = vpop.eup %1644  ;;  %1656 = vpow2.f32 %v1039_v27  ;;  %v1067_v62 = vmul.f32 1.442695, %v951_v39  ;;  %v910_v52 = vsub.f32 %v2160_v42, %v2340_v33  ;;  %v949_v37 = vsub.f32 %v2158_v41, %v2263_v34  ;;  %v2710_v42 = vld [vmem:[#allocation23_spill] sm:$0xff] }
 0x308   : > { %v1097_v23 = vadd.f32 %v2331_v22, %v1096_v4  ;;  %v2364_v12 = vpop.eup %1646  ;;  %1658 = vpow2.f32 %v1043_v6  ;;  %v1083_v4 = vmul.f32 1.442695, %v959_v31  ;;  %v2709_v31 = vld [vmem:[#allocation21_spill] sm:$0xff] }
 0x309   : > { %v2369_v58 = vpop.eup %1648  ;;  %1660 = vpow2.f32 %v1047_v3  ;;  %v969_v3 = vmul.f32 1.442695, %v902_v13  ;;  %v947_v13 = vsub.f32 %v2152_v38, %v2263_v34  ;;  %v985_v50 = vmul.f32 1.442695, %v910_v52 }
 0x30a   : > { %v1098_v54 = vadd.f32 %v2337_v20, %v1097_v23  ;;  %v2373_v23 = vpop.eup %1650  ;;  %1662 = vpow2.f32 %v1051_v57 }
 0x30b   : > { %v2378_v6 = vpop.eup %1652  ;;  %1664 = vpow2.f32 %v1075_v53  ;;  %v973_v53 = vmul.f32 1.442695, %v904_v1 }
 0x30c   : > { %v1099_v35 = vadd.f32 %v2342_v5, %v1098_v54  ;;  %v906_v54 = vsub.f32 %v2709_v31, %v2340_v33  ;;  %v2382_v59 = vpop.eup %1654  ;;  %1666 = vpow2.f32 %v1083_v4 }
 0x30d   : > { %v2387_v57 = vpop.eup %1656  ;;  %1668 = vpow2.f32 %v1087_v19 }
 0x30e   : > { %v1100_v14 = vadd.f32 %v2346_v15, %v1099_v35  ;;  %v953_v35 = vsub.f32 %v2174_v49, %v2263_v34  ;;  %1670 = vpow2.f32 %v965_v26  ;;  %v977_v4 = vmul.f32 1.442695, %v906_v54 }
 0x30f   : > { %1672 = vpow2.f32 %v969_v3  ;;  %v981_v26 = vmul.f32 1.442695, %v908_v51  ;;  %v945_v54 = vsub.f32 %v2710_v42, %v2263_v34  ;;  %v1059_v3 = vmul.f32 1.442695, %v947_v13 }
 0x310   : > { %v1101_v27 = vadd.f32 %v2351_v0, %v1100_v14  ;;  %v2391_v14 = vpop.eup %1658  ;;  %v1071_v1 = vmul.f32 1.442695, %v953_v35  ;;  %1674 = vpow2.f32 %v1079_v55  ;;  %v2711_v55 = vld [vmem:[#allocation27_spill] sm:$0xff]  ;;  %v1181_v34 = vpack.c.bf16 %v2369_v58, %v2364_v12 }
 0x311   : > { %v2396_v49 = vpop.eup %1660  ;;  %1676 = vpow2.f32 %v973_v53  ;;  %v916_v13 = vsub.f32 %v2198_v30, %v2340_v33 }
 0x312   : > { %v1102_v45 = vadd.f32 %v2355_v8, %v1101_v27  ;;  %v2400_v19 = vpop.eup %1662  ;;  %v912_v27 = vsub.f32 %v2168_v46, %v2340_v33  ;;  %1678 = vpow2.f32 %v1067_v62  ;;  %v1063_v46 = vmul.f32 1.442695, %v949_v37  ;;  %1209 = vmatpush.bf16.msra.mxu0 %v1181_v34 }
 0x313   : > { %v2405_v39 = vpop.eup %1664  ;;  %1680 = vpow2.f32 %v977_v4 }
 0x314   : > { %v1103_v31 = vadd.f32 %v2360_v47, %v1102_v45  ;;  %v2409_v45 = vpop.eup %1666  ;;  %1682 = vpow2.f32 %v1071_v1  ;;  %v989_v62 = vmul.f32 1.442695, %v912_v27 }
 0x315   : > { %v2414_v35 = vpop.eup %1668  ;;  %1684 = vpow2.f32 %v981_v26 }
 0x316   : > { %v1104_v38 = vadd.f32 %v2364_v12, %v1103_v31  ;;  %v914_v31 = vsub.f32 %v2711_v55, %v2340_v33  ;;  %v2418_v44 = vpop.eup %1670  ;;  %v1197_v4 = vpack.c.bf16 %v2414_v35, %v2409_v45  ;;  %1686 = vpow2.f32 %v1059_v3 }
 0x317   : > { %v2423_v53 = vpop.eup %1672  ;;  %1688 = vpow2.f32 %v985_v50  ;;  %v1179_v3 = vpack.c.bf16 %v2360_v47, %v2355_v8  ;;  %v920_v55 = vsub.f32 %v2072_v61, %v2340_v33  ;;  %v2713_v8 = vld [vmem:[#allocation12_spill] sm:$0xff] }
 0x318   : > { %v1105_v41 = vadd.f32 %v2369_v58, %v1104_v38  ;;  %v2429_v52 = vpop.eup %1674  ;;  %v1055_v38 = vmul.f32 1.442695, %v945_v54  ;;  %v1128_v1 = vadd.f32 %v2423_v53, %v2418_v44  ;;  %v2712_v58 = vld [vmem:[#allocation28_spill] sm:$0xff]  ;;  %v993_v27 = vmul.f32 1.442695, %v914_v31  ;;  %1223 = vmatpush.bf16.msra.mxu1 %v1197_v4 }
 0x319   : > { %v2434_v12 = vpop.eup %1676  ;;  %v918_v30 = vsub.f32 %v2712_v58, %v2340_v33  ;;  %1690 = vpow2.f32 %v1063_v46  ;;  %v1195_v50 = vpack.c.bf16 %v2429_v52, %v2405_v39  ;;  %1210 = vmatpush.bf16.msra.mxu0 %v1179_v3  ;;  %v922_v47 = vsub.f32 %v2713_v8, %v2340_v33 }
 0x31a   : > { %v1106_v51 = vadd.f32 %v2373_v23, %v1105_v41  ;;  %v2438_v26 = vpop.eup %1678  ;;  %v1129_v54 = vadd.f32 %v2434_v12, %v1128_v1  ;;  %1692 = vpow2.f32 %v989_v62  ;;  %v1177_v1 = vpack.c.bf16 %v2351_v0, %v2346_v15 }
 0x31b   : > { %v2444_v41 = vpop.eup %1680  ;;  %1694 = vpow2.f32 %v1055_v38  ;;  %v1001_v61 = vmul.f32 1.442695, %v918_v30  ;;  %v1009_v8 = vmul.f32 1.442695, %v922_v47 }
 0x31c   : > { %v1107_v37 = vadd.f32 %v2378_v6, %v1106_v51  ;;  %v997_v51 = vmul.f32 1.442695, %v916_v13  ;;  %v2450_v31 = vpop.eup %1682  ;;  %v1130_v34 = vadd.f32 %v2444_v41, %v1129_v54  ;;  %1696 = vpow2.f32 %v993_v27  ;;  %1224 = vmatpush.bf16.msra.mxu1 %v1195_v50 }
 0x31d   : > { %v2454_v4 = vpop.eup %1684  ;;  %v1005_v27 = vmul.f32 1.442695, %v920_v55  ;;  %v1193_v30 = vpack.c.bf16 %v2450_v31, %v2438_v26  ;;  %1211 = vmatpush.bf16.msra.mxu0 %v1177_v1  ;;  %v932_v55 = vsub.f32 %v2100_v11, %v2340_v33  ;;  %v1175_v1 = vpack.c.bf16 %v2342_v5, %v2337_v20 }
 0x31e   : > { %v1108_v42 = vadd.f32 %v2382_v59, %v1107_v37  ;;  %v1687_v13 = vpop.eup %1686  ;;  %v924_v37 = vsub.f32 %v2082_v2, %v2340_v33  ;;  %v1131_v38 = vadd.f32 %v2454_v4, %v1130_v34  ;;  %1698 = vpow2.f32 %v997_v51  ;;  %v2715_v51 = vld [vmem:[#allocation15_spill] sm:$0xff] }
 0x31f   : > { %v2464_v58 = vpop.eup %1688  ;;  %v928_v2 = vsub.f32 %v2092_v7, %v2340_v33  ;;  %v934_v34 = vsub.f32 %v2715_v51, %v2340_v33  ;;  %1700 = vpow2.f32 %v1001_v61  ;;  %v938_v11 = vsub.f32 %v2118_v21, %v2340_v33 }
 0x320   : > { %v1109_v46 = vadd.f32 %v2387_v57, %v1108_v42  ;;  %v2714_v42 = vld [vmem:[#allocation14_spill] sm:$0xff]  ;;  %v1691_v3 = vpop.eup %1690  ;;  %v1132_v15 = vadd.f32 %v2464_v58, %v1131_v38  ;;  %1225 = vmatpush.bf16.msra.mxu1 %v1193_v30  ;;  %1702 = vpow2.f32 %v1005_v27  ;;  %v1013_v61 = vmul.f32 1.442695, %v924_v37 }
 0x321   : > { %v926_v54 = vsub.f32 %v2714_v42, %v2340_v33  ;;  %v2476_v0 = vpop.eup %1692  ;;  %v1191_v47 = vpack.c.bf16 %v1691_v3, %v1687_v13  ;;  %1212 = vmatpush.bf16.msra.mxu0 %v1175_v1  ;;  %v960_v5 = vsub.f32 %v2247_v63, %v2340_v33  ;;  %1704 = vpow2.f32 %v1009_v8 }
 0x322   : > { %v1110_v62 = vadd.f32 %v2391_v14, %v1109_v46  ;;  %v930_v46 = vsub.f32 %v2096_v9, %v2340_v33  ;;  %v936_v9 = vsub.f32 %v2112_v18, %v2340_v33  ;;  %v1133_v38 = vadd.f32 %v2476_v0, %v1132_v15 }
 0x323   : > { %v1017_v51 = vmul.f32 1.442695, %v926_v54  ;;  %v1021_v21 = vmul.f32 1.442695, %v928_v2  ;;  %v1173_v54 = vpack.c.bf16 %v2331_v22, %v2324_v10  ;;  %v956_v1 = vsub.f32 %v2204_v43, %v2340_v33 }
 0x324   : > { %v1111_v50 = vadd.f32 %v2396_v49, %v1110_v62  ;;  %v1695_v62 = vpop.eup %1694  ;;  %1226 = vmatpush.bf16.msra.mxu1 %v1191_v47  ;;  %v1025_v27 = vmul.f32 1.442695, %v930_v46  ;;  %v962_v20 = vsub.f32 %v2259_v17, %v2340_v33  ;;  %1706 = vpow2.f32 %v1013_v61 }
 0x325   : > { %v2488_v42 = vpop.eup %1696  ;;  %v1189_v63 = vpack.c.bf16 %v1695_v62, %v2400_v19  ;;  %1708 = vpow2.f32 %v1017_v51  ;;  %1213 = vmatpush.bf16.msra.mxu0 %v1173_v54  ;;  %v958_v10 = vsub.f32 %v2227_v25, %v2340_v33  ;;  %v1033_v22 = vmul.f32 1.442695, %v934_v34  ;;  %v2718_v54 = vld [vmem:[#allocation20_spill] sm:$0xff] }
 0x326   : > { %v1112_v7 = vadd.f32 %v2400_v19, %v1111_v50  ;;  %v940_v50 = vsub.f32 %v2124_v24, %v2340_v33  ;;  %v1134_v18 = vadd.f32 %v2488_v42, %v1133_v38  ;;  %v2495_v15 = vpop.eup %1698  ;;  %1710 = vpow2.f32 %v1021_v21 }
 0x327   : > { %v2504_v38 = vpop.eup %1700  ;;  %v1085_v43 = vmul.f32 1.442695, %v960_v5  ;;  %1712 = vpow2.f32 %v1025_v27  ;;  %v952_v25 = vsub.f32 %v2172_v48, %v2340_v33  ;;  %v1089_v61 = vmul.f32 1.442695, %v962_v20 }
 0x328   : > { %v1113_v30 = vadd.f32 %v1695_v62, %v1112_v7  ;;  %v1135_v7 = vadd.f32 %v2495_v15, %v1134_v18  ;;  %v2512_v8 = vpop.eup %1702  ;;  %1227 = vmatpush.bf16.msra.mxu1 %v1189_v63  ;;  %v944_v62 = vsub.f32 %v2140_v32, %v2340_v33  ;;  %v1187_v34 = vpack.c.bf16 %v2396_v49, %v2391_v14  ;;  %v1543_v63 = vld [vmem:[#allocation4 + $0x4] sm:$0xf0] }
 0x329   : > { %v1077_v47 = vmul.f32 1.442695, %v956_v1  ;;  %v1037_v51 = vmul.f32 1.442695, %v936_v9  ;;  %v1081_v18 = vmul.f32 1.442695, %v958_v10  ;;  %v948_v5 = vsub.f32 %v2156_v40, %v2340_v33 }
 0x32a   : > { %v1114_v37 = vadd.f32 %v1687_v13, %v1113_v30  ;;  %v1029_v13 = vmul.f32 1.442695, %v932_v55  ;;  %v1136_v46 = vadd.f32 %v2504_v38, %v1135_v7  ;;  %v2520_v55 = vpop.eup %1704  ;;  %v1041_v21 = vmul.f32 1.442695, %v938_v11  ;;  %v2716_v7 = vld [vmem:[#allocation26_spill] sm:$0xff] }
 0x32b   : > { %v1069_v27 = vmul.f32 1.442695, %v952_v25  ;;  %v1045_v40 = vmul.f32 1.442695, %v940_v50  ;;  %v2719_v24 = vsub.f32 %v2132_v28, %v2340_v33  ;;  %v2720_v28 = vld [vmem:[#allocation24_spill] sm:$0xff] }
 0x32c   : > { %v1115_v2 = vadd.f32 %v1691_v3, %v1114_v37  ;;  %v1137_v19 = vadd.f32 %v2512_v8, %v1136_v46  ;;  %v1171_v3 = vpack.c.bf16 %v2317_v60, %v2310_v29  ;;  %1714 = vpow2.f32 %v1029_v13  ;;  %v2530_v29 = vpop.eup %1706  ;;  %1228 = vmatpush.bf16.msra.mxu1 %v1187_v34 }
 0x32d   : > { %v954_v60 = vsub.f32 %v2186_v56, %v2340_v33  ;;  %1716 = vpow2.f32 %v1033_v22  ;;  %v2534_v48 = vpop.eup %1708  ;;  %v1185_v56 = vpack.c.bf16 %v2387_v57, %v2382_v59  ;;  %v1049_v50 = vmul.f32 1.442695, %v2719_v24 }
 0x32e   : > { %v1116_v17 = vadd.f32 %v2438_v26, %v1115_v2  ;;  %v1138_v30 = vadd.f32 %v2520_v55, %v1137_v19  ;;  %1214 = vmatpush.bf16.msra.mxu0 %v1171_v3  ;;  %1718 = vpow2.f32 %v1085_v43  ;;  %v1711_v20 = vpop.eup %1710  ;;  %v1183_v13 = vpack.c.bf16 %v2378_v6, %v2373_v23  ;;  %v1515_v19 = vld [vmem:[#allocation4 + $0x8] sm:$0xf0] }
 0x32f   : > { %1720 = vpow2.f32 %v1089_v61  ;;  %v1713_v9 = vpop.eup %1712  ;;  %v1061_v22 = vmul.f32 1.442695, %v948_v5  ;;  %v946_v25 = vsub.f32 %v2720_v28, %v2340_v33 }
 0x330   : > { %v1117_v26 = vadd.f32 %v2450_v31, %v1116_v17  ;;  %v1139_v49 = vadd.f32 %v2530_v29, %v1138_v30  ;;  %v1169_v31 = vpack.c.bf16 %v2303_v16, %v2296_v36  ;;  %1722 = vpow2.f32 %v1077_v47  ;;  %1229 = vmatpush.bf16.msra.mxu1 %v1185_v56  ;;  %v1513_v17 = vld [vmem:[#allocation4] sm:$0xf] }
 0x331   : > { %v950_v36 = vsub.f32 %v2716_v7, %v2340_v33  ;;  %v1073_v16 = vmul.f32 1.442695, %v954_v60  ;;  %1724 = vpow2.f32 %v1081_v18  ;;  %v1182_v46 = vpack.c.bf16 %v1713_v9, %v1711_v20 }
 0x332   : > { %v1118_v14 = vadd.f32 %v2405_v39, %v1117_v26  ;;  %v1140_v39 = vadd.f32 %v2534_v48, %v1139_v49  ;;  %1215 = vmatpush.bf16.msra.mxu0 %v1169_v31  ;;  %v2551_v11 = vpop.eup %1714  ;;  %1726 = vpow2.f32 %v1037_v51  ;;  %v2572_v23 = vor.u32 %v1543_v63, %v1513_v17  ;;  %v1542_v26 = vld [vmem:[#allocation4 + $0x4] sm:$0xf] }
 0x333   : > { %v2556_v2 = vpop.eup %1716  ;;  %1728 = vpow2.f32 %v1041_v21  ;;  %v1065_v61 = vmul.f32 1.442695, %v950_v36  ;;  %v1053_v30 = vmul.f32 1.442695, %v944_v62  ;;  %v1518_v60 = vor.u32 %v1542_v26, %v1515_v19 }
 0x334   : > { %v1119_v37 = vadd.f32 %v2429_v52, %v1118_v14  ;;  %v1141_v57 = vadd.f32 %v1711_v20, %v1140_v39  ;;  %v2717_v52 = vld [vmem:[#allocation18_spill] sm:$0xff]  ;;  %v2563_v10 = vpop.eup %1718  ;;  %1730 = vpow2.f32 %v1069_v27  ;;  %1230 = vmatpush.bf16.msra.mxu1 %v1183_v13  ;;  %v1180_v51 = vpack.c.bf16 %v2534_v48, %v2530_v29 }
 0x335   : > { %v1167_v1 = vpack.c.bf16 %v2718_v54, %v2717_v52  ;;  %v2568_v3 = vpop.eup %1720  ;;  %1732 = vpow2.f32 %v1073_v16  ;;  %v1057_v31 = vmul.f32 1.442695, %v946_v25  ;;  %v1178_v62 = vpack.c.bf16 %v2520_v55, %v2512_v8  ;;  %v1273_v25 = vld [vmem:[%s1977_s26] sm:$0xff] }
 0x336   : > { %v1120_v59 = vadd.f32 %v2409_v45, %v1119_v37  ;;  %v1142_v43 = vadd.f32 %v1713_v9, %v1141_v57  ;;  %v1723_v6 = vpop.eup %1722  ;;  %1734 = vpow2.f32 %v1045_v40  ;;  %v1198_v34 = vpack.c.bf16 %v2568_v3, %v2563_v10 }
 0x337   : > { %1216 = vmatpush.bf16.msra.mxu0 %v1167_v1  ;;  %v1725_v47 = vpop.eup %1724  ;;  %1736 = vpow2.f32 %v1049_v50  ;;  %1231 = vmatmul.bf16.vlgmr.msra.gmra.mxu1 %v1518_v60  ;;  %v1176_v39 = vpack.c.bf16 %v2504_v38, %v2495_v15  ;;  %v1174_v55 = vpack.c.bf16 %v2488_v42, %v2476_v0  ;;  %v1172_v54 = vpack.c.bf16 %v2464_v58, %v2454_v4 }
 0x338   : > { %v2566_v45 = vadd.f32 %v2414_v35, %v1120_v59  ;;  %v1143_v35 = vadd.f32 %v2551_v11, %v1142_v43  ;;  %v1727_v18 = vpop.eup %1726  ;;  %1738 = vpow2.f32 %v1061_v22  ;;  %1251 = vmatpush.bf16.msrb.mxu1 %v1198_v34  ;;  %v1196_v32 = vpack.c.bf16 %v1725_v47, %v1723_v6 }
 0x339   : > { %v1729_v49 = vpop.eup %1728  ;;  %1740 = vpow2.f32 %v1065_v61  ;;  %v1170_v63 = vpack.c.bf16 %v2444_v41, %v2434_v12  ;;  %v1168_v50 = vpack.c.bf16 %v2423_v53, %v2418_v44  ;;  %v1184_v58 = vpack.c.bf16 %v2556_v2, %v2551_v11 }
 0x33a   : > { %1217 = vmatmul.bf16.vlgmr.msra.gmra.mxu0 %v2572_v23  ;;  %v1144_v14 = vadd.f32 %v2556_v2, %v1143_v35  ;;  %v1731_v20 = vpop.eup %1730  ;;  %1742 = vpow2.f32 %v1053_v30  ;;  %v1186_v42 = vpack.c.bf16 %v1729_v49, %v1727_v18  ;;  %v1122_v12 = vrot.slane %v2566_v45, 4  ;;  %v1275_v30 = vld [vmem:[%s1977_s26 + $0x10] sm:$0xff] }
 0x33b   : > { %1237 = vmatpush.bf16.msrb.mxu0 %v1182_v46  ;;  %v1733_v33 = vpop.eup %1732  ;;  %1744 = vpow2.f32 %v1057_v31 }
 0x33c   : > { %v1145_v5 = vadd.f32 %v1727_v18, %v1144_v14  ;;  %v1735_v21 = vpop.eup %1734  ;;  %1252 = vmatpush.bf16.msrb.mxu1 %v1196_v32  ;;  %v1194_v37 = vpack.c.bf16 %v1733_v33, %v1731_v20  ;;  %v1123_v41 = vadd.f32 %v1122_v12, %v2566_v45 }
 0x33d   : > { %v1737_v48 = vpop.eup %1736 }
 0x33e   : > { %v1146_v29 = vadd.f32 %v1729_v49, %v1145_v5  ;;  %v1739_v56 = vpop.eup %1738  ;;  %v1188_v38 = vpack.c.bf16 %v1737_v48, %v1735_v21  ;;  %v1124_v44 = vrot.slane %v1123_v41, 2 }
 0x33f   : > { %1238 = vmatpush.bf16.msrb.mxu0 %v1180_v51  ;;  %v1741_v27 = vpop.eup %1740 }
 0x340   : > { %v1147_v9 = vadd.f32 %v1735_v21, %v1146_v29  ;;  %1253 = vmatpush.bf16.msrb.mxu1 %v1194_v37  ;;  %v1743_v36 = vpop.eup %1742  ;;  %v1192_v16 = vpack.c.bf16 %v1741_v27, %v1739_v56  ;;  %v1125_v53 = vadd.f32 %v1124_v44, %v1123_v41 }
 0x341   : > { %v1745_v8 = vpop.eup %1744 }
 0x342   : > { %v1148_v7 = vadd.f32 %v1737_v48, %v1147_v9  ;;  %v1190_v52 = vpack.c.bf16 %v1745_v8, %v1743_v36  ;;  %v1126_v22 = vrot.slane %v1125_v53, 1 }
 0x343   : > { %1239 = vmatpush.bf16.msrb.mxu0 %v1178_v62  ;;  %v1274_v62 = vld [vmem:[%s1977_s26 + $0x8] sm:$0xff] }
 0x344   : > { %v1149_v40 = vadd.f32 %v1743_v36, %v1148_v7  ;;  %1254 = vmatpush.bf16.msrb.mxu1 %v1192_v16  ;;  %v1127_v43 = vadd.f32 %v1126_v22, %v1125_v53 }
 0x346   : > { %v1150_v59 = vadd.f32 %v1745_v8, %v1149_v40  ;;  %1746 = vrcp.f32 %v1127_v43 }
 0x347   : > { %1240 = vmatpush.bf16.msrb.mxu0 %v1176_v39 }
 0x348   : > { %v1151_v57 = vadd.f32 %v1739_v56, %v1150_v59  ;;  %1255 = vmatpush.bf16.msrb.mxu1 %v1190_v52 }
 0x34a   : > { %v1152_v1 = vadd.f32 %v1741_v27, %v1151_v57  ;;  %v1276_v27 = vld [vmem:[%s1977_s26 + $0x18] sm:$0xff] }
 0x34b   : > { %1241 = vmatpush.bf16.msrb.mxu0 %v1174_v55 }
 0x34c   : > { %v1153_v15 = vadd.f32 %v1731_v20, %v1152_v1  ;;  %1256 = vmatpush.bf16.msrb.mxu1 %v1188_v38  ;;  %v1747_v17 = vpop.eup %1746 }
 0x34e   : > { %v1154_v24 = vadd.f32 %v1733_v33, %v1153_v15 }
 0x34f   : > { %1242 = vmatpush.bf16.msrb.mxu0 %v1172_v54 }
 0x350   : > { %v1155_v0 = vadd.f32 %v1723_v6, %v1154_v24  ;;  %1257 = vmatpush.bf16.msrb.mxu1 %v1186_v42 }
 0x352   : > { %v1156_v13 = vadd.f32 %v1725_v47, %v1155_v0 }
 0x353   : > { %1243 = vmatpush.bf16.msrb.mxu0 %v1170_v63 }
 0x354   : > { %v1157_v4 = vadd.f32 %v2563_v10, %v1156_v13  ;;  %1258 = vmatpush.bf16.msrb.mxu1 %v1184_v58 }
 0x356   : > { %v1158_v46 = vadd.f32 %v2568_v3, %v1157_v4  ;;  %v1278_v3 = vstv %s1277_s15 }
 0x357   : > { %1244 = vmatpush.bf16.msrb.mxu0 %v1168_v50  ;;  %1259 = vmatmul.bf16.vlgmr.msrb.gmra.mxu1 %v1518_v60 }
 0x358   : > { %v1159_v19 = vrot.slane %v1158_v46, 4 }
 0x35a   : > { %1245 = vmatmul.bf16.vlgmr.msrb.gmra.mxu0 %v2572_v23  ;;  %v1160_v23 = vadd.f32 %v1159_v19, %v1158_v46 }
 0x35c   : > { %v1161_v26 = vrot.slane %v1160_v23, 2 }
 0x35e   : > { %v1162_v51 = vadd.f32 %v1161_v26, %v1160_v23 }
 0x360   : > { %v1163_v14 = vrot.slane %v1162_v51, 1 }
 0x362   : > { %v1164_v49 = vadd.f32 %v1163_v14, %v1162_v51 }
 0x364   : > { %1748 = vrcp.f32 %v1164_v49 }
 0x36a   : > { %v1749_v32 = vpop.eup %1748 }
 0x3b4   : > { %v1232_v11 = vpop.f32.mrf.mxu1 }
 0x3b7   : > { %v1218_v10 = vpop.f32.mrf.mxu0 }
 0x3b8   : > { %v1233_v2 = vadd.f32 %v1232_v11, %v1218_v10 }
 0x3ba   : > { %v1267_v28 = vmul.f32 %v1747_v17, %v1233_v2 }
 0x3bc   : > { %v1279_v61 = vmul.f32 %v1278_v3, %v1267_v28  ;;  %v1234_v35 = vpop.f32.mrf.mxu1 }
 0x3be   : > { %v1283_v45 = vadd.f32 %v1279_v61, %v1273_v25 }
 0x3bf   : > { %v1220_v6 = vpop.f32.mrf.mxu0 }
 0x3c0   : > { %1287 = vst [vmem:[%s2606_s16] sm:$0xff] %v1283_v45  ;;  %v1235_v34 = vadd.f32 %v1234_v35, %v1220_v6 }
 0x3c2   : > { %v1269_v47 = vmul.f32 %v1747_v17, %v1235_v34 }
 0x3c4   : > { %v1281_v60 = vmul.f32 %v1278_v3, %v1269_v47 }
 0x3c6   : > { %v1285_v18 = vadd.f32 %v1281_v60, %v1275_v30 }
 0x3c8   : > { %1289 = vst [vmem:[%s2606_s16 + $0x10] sm:$0xff] %v1285_v18 }
 0x3d4   : > { %v1260_v20 = vpop.f32.mrf.mxu1 }
 0x3d7   : > { %v1246_v31 = vpop.f32.mrf.mxu0 }
 0x3d8   : > { %v1261_v5 = vadd.f32 %v1260_v20, %v1246_v31 }
 0x3da   : > { %v1268_v33 = vmul.f32 %v1749_v32, %v1261_v5 }
 0x3dc   : > { %v1280_v21 = vmul.f32 %v1278_v3, %v1268_v33  ;;  %v1262_v56 = vpop.f32.mrf.mxu1 }
 0x3de   : > { %v1284_v48 = vadd.f32 %v1280_v21, %v1274_v62 }
 0x3df   : > { %v1248_v29 = vpop.f32.mrf.mxu0 }
 0x3e0   : > { %1288 = vst [vmem:[%s2606_s16 + $0x8] sm:$0xff] %v1284_v48  ;;  %v1263_v9 = vadd.f32 %v1262_v56, %v1248_v29 }
 0x3e2   : > { %v1270_v37 = vmul.f32 %v1749_v32, %v1263_v9 }
 0x3e4   : > { %v1282_v39 = vmul.f32 %v1278_v3, %v1270_v37 }
 0x3e6   : > { %v1286_v7 = vadd.f32 %v1282_v39, %v1276_v27 }
 0x3e8   : > { %1290 = vst [vmem:[%s2606_s16 + $0x18] sm:$0xff] %v1286_v7 }
 0x3e9   : > { %1807 = shalt.err (!%p1804_p13)
}
 0x3ea   : > { %s1867_s23 = smov 256   ;;  %s1868_s14 = smov 16  }
 0x3eb   : > { %1549 = dma.vmem_to_hbm [thread:$0]  (%p1948_p9), %s1307_s7, 512, %s1309_s8, %s1292_s28, %s1867_s23, %s1867_s23, %s1868_s14  }
 0x3ec PF: > { %s1323_s15 = sand.u32 1, %s1842_s17   ;;  %p1556_p0 = pnand %p1399_p12, %p1955_p11 }
 0x3ed   : > { %s1324_s16 = scalar_lea.sflag [#allocation8], %s1323_s15 }
 0x3ee   : > { %p1557_p1 = pneg %p1556_p0 }
 0x3f0   : > { %1837 = dma.done.wait (%p1557_p1), %s1324_s16, 512  }
 0x3f1   : > { %1839 = vsyncadd (%p1557_p1), %s1324_s16, 4294966784  ;;  %s21_s22 = sadd.s32 1, %s1862_s22   ;;  %s2721_s17 = smov %s1846_s18 }
 0x3f2   : > { %p18_p2 = scmp.ge.s32.totalorder %s21_s22, 4   ;;  %s2722_s18 = smov %s1850_s19 }
 0x3f3   : > { %s2723_s19 = smov %s1953_s30  ;;  %s2724_s20 = smov %s1858_s21 }
 0x3f4   : > { %s2725_s21 = smov %s2727_s24  ;;  %20 = sbr.rel (!%p18_p2) target bundleno = 8 (0x8), region = 88 }
 0x3f9   :  { %1330 = vsyncpa [#allocation7], 1 }
 0x3fa   :  { %1332 = vsyncpa [#allocation7 + $0x1], 1 }
 0x3fb   :  { %1333 = vsyncpa [#allocation8], 1 }
 0x3fc   :  { %1335 = vsyncpa [#allocation8 + $0x1], 1 }

</bundles_post_ra>
